<compile_context>
chip_gen: v5e
topology: v5e:2x2
jax: 0.10.0
libtpu: 0.0.40
codegen_flags: <defaults>
</compile_context>

<pallas_src>
import functools

import jax
import jax.numpy as jnp
from jax import lax
from jax.experimental import pallas as pl
from jax.experimental.pallas import tpu as pltpu


def _round_up(x, m):
    return (x + m - 1) // m * m


def _conv_prelu_kernel(x_ref, w_ref, b_ref, alpha_ref, o_ref, p_ref, *,
                       kh_size, kw_size, stride, c_pad, w_q, m_tile, num_m):
    """im2col + single GEMM + bias + PReLU for one M tile.

    x_ref:     (S*S, Cpad, Min)     stride-phase planes, zero-padded, operand dtype
    w_ref:     (Cout, KH*KW*Cpad)   flattened filters (operand dtype)
    b_ref:     (Cout, 1)            bias (f32)
    alpha_ref: (1,)                 PReLU shared slope (SMEM, f32)
    o_ref:     (Cout, m_tile)       lane-dense output tile (border cols discarded
                                    by the wrapper)
    p_ref:     (KH*KW*Cpad, m_tile) im2col scratch (operand dtype)
    """
    if num_m > 1:
        base = pl.multiple_of(pl.program_id(0) * m_tile, 128)
    else:
        base = 0  # static offsets for the single-tile case

    # im2col: tap (kh, kw) fills Cpad consecutive rows of P with a contiguous
    # lane slice of one phase plane.  All stores are full-width (m_tile is a
    # multiple of 128) and full-sublane-tile (Cpad rows), i.e. unmasked.
    for kh_i in range(kh_size):
        for kw_i in range(kw_size):
            q = (kh_i % stride) * stride + (kw_i % stride)
            off = (kh_i // stride) * w_q + (kw_i // stride)
            t = kh_i * kw_size + kw_i
            p_ref[t * c_pad:(t + 1) * c_pad, :] = x_ref[
                q, :, pl.ds(base + off, m_tile)].astype(p_ref.dtype)

    # ONE MXU contraction over K = KH*KW*Cpad with f32 accumulation.
    y = lax.dot_general(
        w_ref[...], p_ref[...],
        (((1,), (0,)), ((), ())),
        preferred_element_type=jnp.float32)              # (Cout, m_tile) f32

    y = y + b_ref[...]                                   # (Cout, 1) broadcast
    alpha = alpha_ref[0]                                  # PReLU shared slope
    y = jnp.where(y > 0, y, alpha * y)
    o_ref[...] = y.astype(o_ref.dtype)


def conv_with_prelu(x_nchw, weight_oihw, bias, alpha, *, stride=1, padding=0,
                    operand_dtype=jnp.bfloat16, m_tile=None):
    """Conv2d(stride, padding) + PReLU, matching the PyTorch module.

    x_nchw:      (N, Cin, H, W)  float32
    weight_oihw: (Cout, Cin, KH, KW)
    bias:        (Cout,)
    alpha:       scalar (PReLU shared parameter)
    operand_dtype: MXU operand dtype (bf16 default; f32 for exact parity)
    returns:     (N, Cout, Hout, Wout)  in x's dtype
    """
    n, c_in, h, w = x_nchw.shape
    c_out, _, kh, kw = weight_oihw.shape
    s = stride
    h_out = (h + 2 * padding - kh) // s + 1
    w_out = (w + 2 * padding - kw) // s + 1

    # Sublane tile of the operand dtype: 8 rows for f32, 16 for bf16.
    itemsize = jnp.dtype(operand_dtype).itemsize
    sublane = 8 * (4 // itemsize)
    c_pad = _round_up(c_in, sublane)

    # ---- layout plumbing (pure JAX, done once) ------------------------------
    hp0, wp0 = h + 2 * padding, w + 2 * padding
    hp = _round_up(hp0, s)         # pad up so the stride-phase split is exact
    wp = _round_up(wp0, s)
    hq, wq = hp // s, wp // s
    n_cols = n * hq * wq           # real output columns (incl. border)
    max_off = ((kh - 1) // s) * wq + (kw - 1) // s   # largest tap lane offset

    # Output M: padded to a multiple of 128 (lane-dense stores); optionally
    # tiled so the K*M scratch stays small (v7x: 64 MiB VMEM) and the grid can
    # be sharded across TensorCores.
    if m_tile is None:
        m_tile = min(_round_up(n_cols, 128), 2048)
    m_tile = _round_up(m_tile, 128)
    m_out = _round_up(n_cols, m_tile)
    num_m = m_out // m_tile
    # Input plane width: every tap slice [base+off : base+off+m_tile] must be
    # in-bounds -> planes carry max_off extra (zero) columns.
    m_in = _round_up(m_out + max_off, 128)
    assert m_in >= m_out + max_off
    k_total = kh * kw * c_pad

    x_pad = jnp.pad(
        x_nchw,
        ((0, 0), (0, 0),
         (padding, padding + (hp - hp0)),
         (padding, padding + (wp - wp0))))
    # space-to-batch:
    #   x_s2b[ph*s+pw, c, n*hq*wq + i*wq + j] = x_pad[n, c, i*s+ph, j*s+pw]
    x_s2b = jnp.transpose(
        x_pad.reshape(n, c_in, hq, s, wq, s),
        (3, 5, 1, 0, 2, 4)).reshape(s * s, c_in, n_cols)
    # Zero-pad channels to a full sublane tile and lanes to m_in, cast to the
    # MXU operand dtype.
    x_s2b = jnp.pad(x_s2b, ((0, 0), (0, c_pad - c_in), (0, m_in - n_cols)))
    x_s2b = x_s2b.astype(operand_dtype)

    # Filters as a single 2D tile; row order (kh, kw, c_pad) matches P's rows.
    w_p = jnp.pad(weight_oihw, ((0, 0), (0, c_pad - c_in), (0, 0), (0, 0)))
    w2 = jnp.transpose(w_p, (0, 2, 3, 1)).reshape(c_out, k_total)
    w2 = w2.astype(operand_dtype)
    b2 = bias.reshape(c_out, 1).astype(jnp.float32)
    a1 = jnp.asarray(alpha, jnp.float32).reshape((1,))

    kernel = functools.partial(
        _conv_prelu_kernel,
        kh_size=kh, kw_size=kw, stride=s, c_pad=c_pad,
        w_q=wq, m_tile=m_tile, num_m=num_m)

    out_flat = pl.pallas_call(
        kernel,
        out_shape=jax.ShapeDtypeStruct((c_out, m_out), x_nchw.dtype),
        grid_spec=pltpu.PrefetchScalarGridSpec(
            num_scalar_prefetch=0,
            grid=(num_m,),  # independent M tiles
            in_specs=[
                # Full phase-plane slab each step (block index constant, so it
                # is fetched once and kept resident across M tiles).
                pl.BlockSpec((s * s, c_pad, m_in), lambda j: (0, 0, 0)),
                pl.BlockSpec((c_out, k_total), lambda j: (0, 0)),
                pl.BlockSpec((c_out, 1), lambda j: (0, 0)),
                pl.BlockSpec(memory_space=pltpu.SMEM),        # alpha scalar
            ],
            out_specs=pl.BlockSpec((c_out, m_tile), lambda j: (0, j)),
            scratch_shapes=[pltpu.VMEM((k_total, m_tile), operand_dtype)],
        ),
        compiler_params=pltpu.CompilerParams(
            dimension_semantics=("parallel",)),
    )(x_s2b, w2, b2, a1)

    # Drop the lane padding and the phase-plane border columns, emit NCHW.
    out = out_flat[:, :n_cols].reshape(c_out, n, hq, wq)[:, :, :h_out, :w_out]
    return jnp.transpose(out, (1, 0, 2, 3))


def _reference(x_nchw, weight_oihw, bias, alpha, *, stride, padding):
    """Pure-JAX reference (mirrors torch Conv2d + PReLU) for validation."""
    y = lax.conv_general_dilated(
        x_nchw, weight_oihw,
        window_strides=(stride, stride),
        padding=[(padding, padding), (padding, padding)],
        dimension_numbers=("NCHW", "OIHW", "NCHW"),
    )
    y = y + bias.reshape(1, -1, 1, 1)
    return jnp.where(y > 0, y, alpha * y)


if __name__ == "__main__":
    # Module config (deepjscc-style conv): Cin=4, Cout=8, k=5, stride=2, pad=2.
    in_channels, out_channels = 4, 8
    kernel_size, stride, padding = 5, 2, 2
    batch, spatial = 2, 16

    key = jax.random.PRNGKey(0)
    kx, kw_, kb = jax.random.split(key, 3)

    # Deterministic parameter init (shapes from nn.Conv2d / nn.PReLU).
    # kaiming_normal_(mode='fan_out', nonlinearity='leaky_relu', a=0):
    #   gain = sqrt(2), fan_out = Cout * KH * KW, std = gain / sqrt(fan_out)
    fan_out = out_channels * kernel_size * kernel_size
    w_std = (2.0 / fan_out) ** 0.5
    weight = (w_std * jax.random.normal(
        kw_, (out_channels, in_channels, kernel_size, kernel_size))
    ).astype(jnp.float32)
    fan_in = in_channels * kernel_size * kernel_size
    b_bound = 1.0 / (fan_in ** 0.5)
    bias = jax.random.uniform(kb, (out_channels,), jnp.float32,
                              -b_bound, b_bound)
    alpha = jnp.float32(0.25)  # nn.PReLU() default init

    x = jax.random.normal(kx, (batch, in_channels, spatial, spatial),
                          jnp.float32)

    ref = _reference(x, weight, bias, alpha, stride=stride, padding=padding)

    # Default (performance) path: bf16 MXU operands, f32 accumulate/epilogue.
    out_bf16 = conv_with_prelu(x, weight, bias, alpha,
                               stride=stride, padding=padding)
    out_bf16 = jax.block_until_ready(out_bf16)
    assert out_bf16.shape == ref.shape, (out_bf16.shape, ref.shape)
    assert jnp.allclose(out_bf16, ref, atol=3e-2, rtol=3e-2), \
        float(jnp.max(jnp.abs(out_bf16 - ref)))

    # Exact-parity path: f32 MXU operands, tight tolerance.
    out_f32 = conv_with_prelu(x, weight, bias, alpha,
                              stride=stride, padding=padding,
                              operand_dtype=jnp.float32)
    out_f32 = jax.block_until_ready(out_f32)
    assert out_f32.shape == ref.shape, (out_f32.shape, ref.shape)
    assert jnp.allclose(out_f32, ref, atol=1e-4, rtol=1e-4), \
        float(jnp.max(jnp.abs(out_f32 - ref)))

    print("KERNEL_OK")
</pallas_src>

<mosaic_0001>
module attributes {stable_mosaic.version = 11 : i64} {
  func.func @_conv_prelu_kernel(%arg0: i32, %arg1: memref<4x16x384xbf16, #tpu.memory_space<vmem>>, %arg2: memref<8x400xbf16, #tpu.memory_space<vmem>>, %arg3: memref<8x1xf32, #tpu.memory_space<vmem>>, %arg4: memref<1xf32, #tpu.memory_space<smem>>, %arg5: memref<8x256xf32, #tpu.memory_space<vmem>>, %arg6: memref<400x256xbf16, #tpu.memory_space<vmem>>) attributes {dimension_semantics = [#tpu.dimension_semantics<parallel>], iteration_bounds = array<i64: 1>, scalar_prefetch = 0 : i64, scratch_operands = 1 : i64, tpu.core_type = #tpu.core_type<tc>, window_params = [{pipeline_mode = #tpu.pipeline_mode<synchronous>, transform_indices = @transform_0, window_bounds = array<i64: 4, 16, 384>}, {pipeline_mode = #tpu.pipeline_mode<synchronous>, transform_indices = @transform_1, window_bounds = array<i64: 8, 400>}, {pipeline_mode = #tpu.pipeline_mode<synchronous>, transform_indices = @transform_2, window_bounds = array<i64: 8, 1>}, {transform_indices = @transform_3, window_bounds = array<i64: 1>}, {transform_indices = @transform_4, window_bounds = array<i64: 8, 256>}]} {
    %c0 = arith.constant 0 : index
    %c0_0 = arith.constant 0 : index
    %c0_1 = arith.constant 0 : index
    %0 = vector.load %arg1[%c0, %c0_0, %c0_1] : memref<4x16x384xbf16, #tpu.memory_space<vmem>>, vector<1x16x256xbf16>
    %1 = vector.shape_cast %0 : vector<1x16x256xbf16> to vector<16x256xbf16>
    %c0_2 = arith.constant 0 : index
    %c0_3 = arith.constant 0 : index
    %2 = vector.load %arg6[%c0_2, %c0_3] : memref<400x256xbf16, #tpu.memory_space<vmem>>, vector<16x256xbf16>
    tpu.vector_store %arg6[%c0_2, %c0_3], %1 {strides = array<i32>} : memref<400x256xbf16, #tpu.memory_space<vmem>>, vector<16x256xbf16>,
    %c1 = arith.constant 1 : index
    %c0_4 = arith.constant 0 : index
    %c0_5 = arith.constant 0 : index
    %3 = vector.load %arg1[%c1, %c0_4, %c0_5] : memref<4x16x384xbf16, #tpu.memory_space<vmem>>, vector<1x16x256xbf16>
    %4 = vector.shape_cast %3 : vector<1x16x256xbf16> to vector<16x256xbf16>
    %c16 = arith.constant 16 : index
    %c0_6 = arith.constant 0 : index
    %5 = vector.load %arg6[%c16, %c0_6] : memref<400x256xbf16, #tpu.memory_space<vmem>>, vector<16x256xbf16>
    tpu.vector_store %arg6[%c16, %c0_6], %4 {strides = array<i32>} : memref<400x256xbf16, #tpu.memory_space<vmem>>, vector<16x256xbf16>,
    %c0_7 = arith.constant 0 : index
    %c0_8 = arith.constant 0 : index
    %c1_9 = arith.constant 1 : index
    %6 = vector.load %arg1[%c0_7, %c0_8, %c1_9] : memref<4x16x384xbf16, #tpu.memory_space<vmem>>, vector<1x16x256xbf16>
    %7 = vector.shape_cast %6 : vector<1x16x256xbf16> to vector<16x256xbf16>
    %c32 = arith.constant 32 : index
    %c0_10 = arith.constant 0 : index
    %8 = vector.load %arg6[%c32, %c0_10] : memref<400x256xbf16, #tpu.memory_space<vmem>>, vector<16x256xbf16>
    tpu.vector_store %arg6[%c32, %c0_10], %7 {strides = array<i32>} : memref<400x256xbf16, #tpu.memory_space<vmem>>, vector<16x256xbf16>,
    %c1_11 = arith.constant 1 : index
    %c0_12 = arith.constant 0 : index
    %c1_13 = arith.constant 1 : index
    %9 = vector.load %arg1[%c1_11, %c0_12, %c1_13] : memref<4x16x384xbf16, #tpu.memory_space<vmem>>, vector<1x16x256xbf16>
    %10 = vector.shape_cast %9 : vector<1x16x256xbf16> to vector<16x256xbf16>
    %c48 = arith.constant 48 : index
    %c0_14 = arith.constant 0 : index
    %11 = vector.load %arg6[%c48, %c0_14] : memref<400x256xbf16, #tpu.memory_space<vmem>>, vector<16x256xbf16>
    tpu.vector_store %arg6[%c48, %c0_14], %10 {strides = array<i32>} : memref<400x256xbf16, #tpu.memory_space<vmem>>, vector<16x256xbf16>,
    %c0_15 = arith.constant 0 : index
    %c0_16 = arith.constant 0 : index
    %c2 = arith.constant 2 : index
    %12 = vector.load %arg1[%c0_15, %c0_16, %c2] : memref<4x16x384xbf16, #tpu.memory_space<vmem>>, vector<1x16x256xbf16>
    %13 = vector.shape_cast %12 : vector<1x16x256xbf16> to vector<16x256xbf16>
    %c64 = arith.constant 64 : index
    %c0_17 = arith.constant 0 : index
    %14 = vector.load %arg6[%c64, %c0_17] : memref<400x256xbf16, #tpu.memory_space<vmem>>, vector<16x256xbf16>
    tpu.vector_store %arg6[%c64, %c0_17], %13 {strides = array<i32>} : memref<400x256xbf16, #tpu.memory_space<vmem>>, vector<16x256xbf16>,
    %c2_18 = arith.constant 2 : index
    %c0_19 = arith.constant 0 : index
    %c0_20 = arith.constant 0 : index
    %15 = vector.load %arg1[%c2_18, %c0_19, %c0_20] : memref<4x16x384xbf16, #tpu.memory_space<vmem>>, vector<1x16x256xbf16>
    %16 = vector.shape_cast %15 : vector<1x16x256xbf16> to vector<16x256xbf16>
    %c80 = arith.constant 80 : index
    %c0_21 = arith.constant 0 : index
    %17 = vector.load %arg6[%c80, %c0_21] : memref<400x256xbf16, #tpu.memory_space<vmem>>, vector<16x256xbf16>
    tpu.vector_store %arg6[%c80, %c0_21], %16 {strides = array<i32>} : memref<400x256xbf16, #tpu.memory_space<vmem>>, vector<16x256xbf16>,
    %c3 = arith.constant 3 : index
    %c0_22 = arith.constant 0 : index
    %c0_23 = arith.constant 0 : index
    %18 = vector.load %arg1[%c3, %c0_22, %c0_23] : memref<4x16x384xbf16, #tpu.memory_space<vmem>>, vector<1x16x256xbf16>
    %19 = vector.shape_cast %18 : vector<1x16x256xbf16> to vector<16x256xbf16>
    %c96 = arith.constant 96 : index
    %c0_24 = arith.constant 0 : index
    %20 = vector.load %arg6[%c96, %c0_24] : memref<400x256xbf16, #tpu.memory_space<vmem>>, vector<16x256xbf16>
    tpu.vector_store %arg6[%c96, %c0_24], %19 {strides = array<i32>} : memref<400x256xbf16, #tpu.memory_space<vmem>>, vector<16x256xbf16>,
    %c2_25 = arith.constant 2 : index
    %c0_26 = arith.constant 0 : index
    %c1_27 = arith.constant 1 : index
    %21 = vector.load %arg1[%c2_25, %c0_26, %c1_27] : memref<4x16x384xbf16, #tpu.memory_space<vmem>>, vector<1x16x256xbf16>
    %22 = vector.shape_cast %21 : vector<1x16x256xbf16> to vector<16x256xbf16>
    %c112 = arith.constant 112 : index
    %c0_28 = arith.constant 0 : index
    %23 = vector.load %arg6[%c112, %c0_28] : memref<400x256xbf16, #tpu.memory_space<vmem>>, vector<16x256xbf16>
    tpu.vector_store %arg6[%c112, %c0_28], %22 {strides = array<i32>} : memref<400x256xbf16, #tpu.memory_space<vmem>>, vector<16x256xbf16>,
    %c3_29 = arith.constant 3 : index
    %c0_30 = arith.constant 0 : index
    %c1_31 = arith.constant 1 : index
    %24 = vector.load %arg1[%c3_29, %c0_30, %c1_31] : memref<4x16x384xbf16, #tpu.memory_space<vmem>>, vector<1x16x256xbf16>
    %25 = vector.shape_cast %24 : vector<1x16x256xbf16> to vector<16x256xbf16>
    %c128 = arith.constant 128 : index
    %c0_32 = arith.constant 0 : index
    %26 = vector.load %arg6[%c128, %c0_32] : memref<400x256xbf16, #tpu.memory_space<vmem>>, vector<16x256xbf16>
    tpu.vector_store %arg6[%c128, %c0_32], %25 {strides = array<i32>} : memref<400x256xbf16, #tpu.memory_space<vmem>>, vector<16x256xbf16>,
    %c2_33 = arith.constant 2 : index
    %c0_34 = arith.constant 0 : index
    %c2_35 = arith.constant 2 : index
    %27 = vector.load %arg1[%c2_33, %c0_34, %c2_35] : memref<4x16x384xbf16, #tpu.memory_space<vmem>>, vector<1x16x256xbf16>
    %28 = vector.shape_cast %27 : vector<1x16x256xbf16> to vector<16x256xbf16>
    %c144 = arith.constant 144 : index
    %c0_36 = arith.constant 0 : index
    %29 = vector.load %arg6[%c144, %c0_36] : memref<400x256xbf16, #tpu.memory_space<vmem>>, vector<16x256xbf16>
    tpu.vector_store %arg6[%c144, %c0_36], %28 {strides = array<i32>} : memref<400x256xbf16, #tpu.memory_space<vmem>>, vector<16x256xbf16>,
    %c0_37 = arith.constant 0 : index
    %c0_38 = arith.constant 0 : index
    %c10 = arith.constant 10 : index
    %30 = vector.load %arg1[%c0_37, %c0_38, %c10] : memref<4x16x384xbf16, #tpu.memory_space<vmem>>, vector<1x16x256xbf16>
    %31 = vector.shape_cast %30 : vector<1x16x256xbf16> to vector<16x256xbf16>
    %c160 = arith.constant 160 : index
    %c0_39 = arith.constant 0 : index
    %32 = vector.load %arg6[%c160, %c0_39] : memref<400x256xbf16, #tpu.memory_space<vmem>>, vector<16x256xbf16>
    tpu.vector_store %arg6[%c160, %c0_39], %31 {strides = array<i32>} : memref<400x256xbf16, #tpu.memory_space<vmem>>, vector<16x256xbf16>,
    %c1_40 = arith.constant 1 : index
    %c0_41 = arith.constant 0 : index
    %c10_42 = arith.constant 10 : index
    %33 = vector.load %arg1[%c1_40, %c0_41, %c10_42] : memref<4x16x384xbf16, #tpu.memory_space<vmem>>, vector<1x16x256xbf16>
    %34 = vector.shape_cast %33 : vector<1x16x256xbf16> to vector<16x256xbf16>
    %c176 = arith.constant 176 : index
    %c0_43 = arith.constant 0 : index
    %35 = vector.load %arg6[%c176, %c0_43] : memref<400x256xbf16, #tpu.memory_space<vmem>>, vector<16x256xbf16>
    tpu.vector_store %arg6[%c176, %c0_43], %34 {strides = array<i32>} : memref<400x256xbf16, #tpu.memory_space<vmem>>, vector<16x256xbf16>,
    %c0_44 = arith.constant 0 : index
    %c0_45 = arith.constant 0 : index
    %c11 = arith.constant 11 : index
    %36 = vector.load %arg1[%c0_44, %c0_45, %c11] : memref<4x16x384xbf16, #tpu.memory_space<vmem>>, vector<1x16x256xbf16>
    %37 = vector.shape_cast %36 : vector<1x16x256xbf16> to vector<16x256xbf16>
    %c192 = arith.constant 192 : index
    %c0_46 = arith.constant 0 : index
    %38 = vector.load %arg6[%c192, %c0_46] : memref<400x256xbf16, #tpu.memory_space<vmem>>, vector<16x256xbf16>
    tpu.vector_store %arg6[%c192, %c0_46], %37 {strides = array<i32>} : memref<400x256xbf16, #tpu.memory_space<vmem>>, vector<16x256xbf16>,
    %c1_47 = arith.constant 1 : index
    %c0_48 = arith.constant 0 : index
    %c11_49 = arith.constant 11 : index
    %39 = vector.load %arg1[%c1_47, %c0_48, %c11_49] : memref<4x16x384xbf16, #tpu.memory_space<vmem>>, vector<1x16x256xbf16>
    %40 = vector.shape_cast %39 : vector<1x16x256xbf16> to vector<16x256xbf16>
    %c208 = arith.constant 208 : index
    %c0_50 = arith.constant 0 : index
    %41 = vector.load %arg6[%c208, %c0_50] : memref<400x256xbf16, #tpu.memory_space<vmem>>, vector<16x256xbf16>
    tpu.vector_store %arg6[%c208, %c0_50], %40 {strides = array<i32>} : memref<400x256xbf16, #tpu.memory_space<vmem>>, vector<16x256xbf16>,
    %c0_51 = arith.constant 0 : index
    %c0_52 = arith.constant 0 : index
    %c12 = arith.constant 12 : index
    %42 = vector.load %arg1[%c0_51, %c0_52, %c12] : memref<4x16x384xbf16, #tpu.memory_space<vmem>>, vector<1x16x256xbf16>
    %43 = vector.shape_cast %42 : vector<1x16x256xbf16> to vector<16x256xbf16>
    %c224 = arith.constant 224 : index
    %c0_53 = arith.constant 0 : index
    %44 = vector.load %arg6[%c224, %c0_53] : memref<400x256xbf16, #tpu.memory_space<vmem>>, vector<16x256xbf16>
    tpu.vector_store %arg6[%c224, %c0_53], %43 {strides = array<i32>} : memref<400x256xbf16, #tpu.memory_space<vmem>>, vector<16x256xbf16>,
    %c2_54 = arith.constant 2 : index
    %c0_55 = arith.constant 0 : index
    %c10_56 = arith.constant 10 : index
    %45 = vector.load %arg1[%c2_54, %c0_55, %c10_56] : memref<4x16x384xbf16, #tpu.memory_space<vmem>>, vector<1x16x256xbf16>
    %46 = vector.shape_cast %45 : vector<1x16x256xbf16> to vector<16x256xbf16>
    %c240 = arith.constant 240 : index
    %c0_57 = arith.constant 0 : index
    %47 = vector.load %arg6[%c240, %c0_57] : memref<400x256xbf16, #tpu.memory_space<vmem>>, vector<16x256xbf16>
    tpu.vector_store %arg6[%c240, %c0_57], %46 {strides = array<i32>} : memref<400x256xbf16, #tpu.memory_space<vmem>>, vector<16x256xbf16>,
    %c3_58 = arith.constant 3 : index
    %c0_59 = arith.constant 0 : index
    %c10_60 = arith.constant 10 : index
    %48 = vector.load %arg1[%c3_58, %c0_59, %c10_60] : memref<4x16x384xbf16, #tpu.memory_space<vmem>>, vector<1x16x256xbf16>
    %49 = vector.shape_cast %48 : vector<1x16x256xbf16> to vector<16x256xbf16>
    %c256 = arith.constant 256 : index
    %c0_61 = arith.constant 0 : index
    %50 = vector.load %arg6[%c256, %c0_61] : memref<400x256xbf16, #tpu.memory_space<vmem>>, vector<16x256xbf16>
    tpu.vector_store %arg6[%c256, %c0_61], %49 {strides = array<i32>} : memref<400x256xbf16, #tpu.memory_space<vmem>>, vector<16x256xbf16>,
    %c2_62 = arith.constant 2 : index
    %c0_63 = arith.constant 0 : index
    %c11_64 = arith.constant 11 : index
    %51 = vector.load %arg1[%c2_62, %c0_63, %c11_64] : memref<4x16x384xbf16, #tpu.memory_space<vmem>>, vector<1x16x256xbf16>
    %52 = vector.shape_cast %51 : vector<1x16x256xbf16> to vector<16x256xbf16>
    %c272 = arith.constant 272 : index
    %c0_65 = arith.constant 0 : index
    %53 = vector.load %arg6[%c272, %c0_65] : memref<400x256xbf16, #tpu.memory_space<vmem>>, vector<16x256xbf16>
    tpu.vector_store %arg6[%c272, %c0_65], %52 {strides = array<i32>} : memref<400x256xbf16, #tpu.memory_space<vmem>>, vector<16x256xbf16>,
    %c3_66 = arith.constant 3 : index
    %c0_67 = arith.constant 0 : index
    %c11_68 = arith.constant 11 : index
    %54 = vector.load %arg1[%c3_66, %c0_67, %c11_68] : memref<4x16x384xbf16, #tpu.memory_space<vmem>>, vector<1x16x256xbf16>
    %55 = vector.shape_cast %54 : vector<1x16x256xbf16> to vector<16x256xbf16>
    %c288 = arith.constant 288 : index
    %c0_69 = arith.constant 0 : index
    %56 = vector.load %arg6[%c288, %c0_69] : memref<400x256xbf16, #tpu.memory_space<vmem>>, vector<16x256xbf16>
    tpu.vector_store %arg6[%c288, %c0_69], %55 {strides = array<i32>} : memref<400x256xbf16, #tpu.memory_space<vmem>>, vector<16x256xbf16>,
    %c2_70 = arith.constant 2 : index
    %c0_71 = arith.constant 0 : index
    %c12_72 = arith.constant 12 : index
    %57 = vector.load %arg1[%c2_70, %c0_71, %c12_72] : memref<4x16x384xbf16, #tpu.memory_space<vmem>>, vector<1x16x256xbf16>
    %58 = vector.shape_cast %57 : vector<1x16x256xbf16> to vector<16x256xbf16>
    %c304 = arith.constant 304 : index
    %c0_73 = arith.constant 0 : index
    %59 = vector.load %arg6[%c304, %c0_73] : memref<400x256xbf16, #tpu.memory_space<vmem>>, vector<16x256xbf16>
    tpu.vector_store %arg6[%c304, %c0_73], %58 {strides = array<i32>} : memref<400x256xbf16, #tpu.memory_space<vmem>>, vector<16x256xbf16>,
    %c0_74 = arith.constant 0 : index
    %c0_75 = arith.constant 0 : index
    %c20 = arith.constant 20 : index
    %60 = vector.load %arg1[%c0_74, %c0_75, %c20] : memref<4x16x384xbf16, #tpu.memory_space<vmem>>, vector<1x16x256xbf16>
    %61 = vector.shape_cast %60 : vector<1x16x256xbf16> to vector<16x256xbf16>
    %c320 = arith.constant 320 : index
    %c0_76 = arith.constant 0 : index
    %62 = vector.load %arg6[%c320, %c0_76] : memref<400x256xbf16, #tpu.memory_space<vmem>>, vector<16x256xbf16>
    tpu.vector_store %arg6[%c320, %c0_76], %61 {strides = array<i32>} : memref<400x256xbf16, #tpu.memory_space<vmem>>, vector<16x256xbf16>,
    %c1_77 = arith.constant 1 : index
    %c0_78 = arith.constant 0 : index
    %c20_79 = arith.constant 20 : index
    %63 = vector.load %arg1[%c1_77, %c0_78, %c20_79] : memref<4x16x384xbf16, #tpu.memory_space<vmem>>, vector<1x16x256xbf16>
    %64 = vector.shape_cast %63 : vector<1x16x256xbf16> to vector<16x256xbf16>
    %c336 = arith.constant 336 : index
    %c0_80 = arith.constant 0 : index
    %65 = vector.load %arg6[%c336, %c0_80] : memref<400x256xbf16, #tpu.memory_space<vmem>>, vector<16x256xbf16>
    tpu.vector_store %arg6[%c336, %c0_80], %64 {strides = array<i32>} : memref<400x256xbf16, #tpu.memory_space<vmem>>, vector<16x256xbf16>,
    %c0_81 = arith.constant 0 : index
    %c0_82 = arith.constant 0 : index
    %c21 = arith.constant 21 : index
    %66 = vector.load %arg1[%c0_81, %c0_82, %c21] : memref<4x16x384xbf16, #tpu.memory_space<vmem>>, vector<1x16x256xbf16>
    %67 = vector.shape_cast %66 : vector<1x16x256xbf16> to vector<16x256xbf16>
    %c352 = arith.constant 352 : index
    %c0_83 = arith.constant 0 : index
    %68 = vector.load %arg6[%c352, %c0_83] : memref<400x256xbf16, #tpu.memory_space<vmem>>, vector<16x256xbf16>
    tpu.vector_store %arg6[%c352, %c0_83], %67 {strides = array<i32>} : memref<400x256xbf16, #tpu.memory_space<vmem>>, vector<16x256xbf16>,
    %c1_84 = arith.constant 1 : index
    %c0_85 = arith.constant 0 : index
    %c21_86 = arith.constant 21 : index
    %69 = vector.load %arg1[%c1_84, %c0_85, %c21_86] : memref<4x16x384xbf16, #tpu.memory_space<vmem>>, vector<1x16x256xbf16>
    %70 = vector.shape_cast %69 : vector<1x16x256xbf16> to vector<16x256xbf16>
    %c368 = arith.constant 368 : index
    %c0_87 = arith.constant 0 : index
    %71 = vector.load %arg6[%c368, %c0_87] : memref<400x256xbf16, #tpu.memory_space<vmem>>, vector<16x256xbf16>
    tpu.vector_store %arg6[%c368, %c0_87], %70 {strides = array<i32>} : memref<400x256xbf16, #tpu.memory_space<vmem>>, vector<16x256xbf16>,
    %c0_88 = arith.constant 0 : index
    %c0_89 = arith.constant 0 : index
    %c22 = arith.constant 22 : index
    %72 = vector.load %arg1[%c0_88, %c0_89, %c22] : memref<4x16x384xbf16, #tpu.memory_space<vmem>>, vector<1x16x256xbf16>
    %73 = vector.shape_cast %72 : vector<1x16x256xbf16> to vector<16x256xbf16>
    %c384 = arith.constant 384 : index
    %c0_90 = arith.constant 0 : index
    %74 = vector.load %arg6[%c384, %c0_90] : memref<400x256xbf16, #tpu.memory_space<vmem>>, vector<16x256xbf16>
    tpu.vector_store %arg6[%c384, %c0_90], %73 {strides = array<i32>} : memref<400x256xbf16, #tpu.memory_space<vmem>>, vector<16x256xbf16>,
    %c0_91 = arith.constant 0 : index
    %c0_92 = arith.constant 0 : index
    %75 = vector.load %arg2[%c0_91, %c0_92] : memref<8x400xbf16, #tpu.memory_space<vmem>>, vector<8x400xbf16>
    %c0_93 = arith.constant 0 : index
    %c0_94 = arith.constant 0 : index
    %76 = vector.load %arg6[%c0_93, %c0_94] : memref<400x256xbf16, #tpu.memory_space<vmem>>, vector<400x256xbf16>
    %cst = arith.constant dense<0.000000e+00> : vector<8x256xf32>
    %77 = tpu.matmul %75, %76, %cst {dimension_numbers = #tpu.dot_dimension_numbers<[1], [0], [0], [1], [0, 0, 1, 1], [], []>} : vector<8x400xbf16>, vector<400x256xbf16>, vector<8x256xf32> -> vector<8x256xf32>
    %c0_95 = arith.constant 0 : index
    %c0_96 = arith.constant 0 : index
    %78 = vector.load %arg3[%c0_95, %c0_96] : memref<8x1xf32, #tpu.memory_space<vmem>>, vector<8x1xf32>
    %79 = vector.broadcast %78 : vector<8x1xf32> to vector<8x256xf32>
    %80 = arith.addf %77, %79 : vector<8x256xf32>
    %c0_97 = arith.constant 0 : index
    %81 = memref.load %arg4[%c0_97] : memref<1xf32, #tpu.memory_space<smem>>
    %cst_98 = arith.constant 0.000000e+00 : f32
    %82 = vector.broadcast %cst_98 : f32 to vector<8x256xf32>
    %83 = arith.cmpf ogt, %80, %82 : vector<8x256xf32>
    %84 = vector.broadcast %81 : f32 to vector<8x256xf32>
    %85 = arith.mulf %84, %80 : vector<8x256xf32>
    %86 = arith.select %83, %80, %85 : vector<8x256xi1>, vector<8x256xf32>
    %c0_99 = arith.constant 0 : index
    %c0_100 = arith.constant 0 : index
    %87 = vector.load %arg5[%c0_99, %c0_100] : memref<8x256xf32, #tpu.memory_space<vmem>>, vector<8x256xf32>
    tpu.vector_store %arg5[%c0_99, %c0_100], %86 {strides = array<i32>} : memref<8x256xf32, #tpu.memory_space<vmem>>, vector<8x256xf32>,
    return
  }
  func.func @transform_0(%arg0: i32) -> (i32, i32, i32) {
    %c0_i32 = arith.constant 0 : i32
    %c0_i32_0 = arith.constant 0 : i32
    %c0_i32_1 = arith.constant 0 : i32
    %c0_i32_2 = arith.constant 0 : i32
    return %c0_i32, %c0_i32_0, %c0_i32_1 : i32, i32, i32
  }
  func.func @transform_1(%arg0: i32) -> (i32, i32) {
    %c0_i32 = arith.constant 0 : i32
    %c0_i32_0 = arith.constant 0 : i32
    %c0_i32_1 = arith.constant 0 : i32
    return %c0_i32, %c0_i32_0 : i32, i32
  }
  func.func @transform_2(%arg0: i32) -> (i32, i32) {
    %c0_i32 = arith.constant 0 : i32
    %c0_i32_0 = arith.constant 0 : i32
    %c0_i32_1 = arith.constant 0 : i32
    return %c0_i32, %c0_i32_0 : i32, i32
  }
  func.func @transform_3(%arg0: i32) -> i32 {
    %c0_i32 = arith.constant 0 : i32
    %c0_i32_0 = arith.constant 0 : i32
    return %c0_i32 : i32
  }
  func.func @transform_4(%arg0: i32) -> (i32, i32) {
    %c0_i32 = arith.constant 0 : i32
    %c0_i32_0 = arith.constant 0 : i32
    return %c0_i32, %arg0 : i32, i32
  }
}

</mosaic_0001>

<bundles_post_ra>
// kernel: tpu_custom_call.1
= control target key start
LH: loop header
LB: loop body
LE: loop exit
PB: predicated region body
PF: predicated region fallthrough
CT: control target
= control target key end

     0   :  { %10 = vsyncpa [#allocation5], 0  ;;  %s1801_s0 = inlined_call_operand.hbm [shape: bf16[4,16,384], index: 0, kind: input, shape index: {}]   ;;  %s1802_s1 = inlined_call_operand.hbm [shape: bf16[8,400], index: 1, kind: input, shape index: {}]   ;;  %s1803_s2 = inlined_call_operand.vmem [shape: f32[8,1], index: 2, kind: input, shape index: {}]   ;;  %s1804_s3 = inlined_call_operand.<no memory space> [shape: f32[1], index: 3, kind: input, shape index: {}]   ;;  %s1805_s4 = inlined_call_operand.hbm [shape: f32[8,256], index: 4, kind: output, shape index: {}]  }
   0x1   :  { %11 = vsyncpa [#allocation8], 0 }
   0x2   :  { %12 = vsyncpa [#allocation6], 0  ;;  %s17_s17 = sshll.u32 %s1801_s0, 4  ;;  %s1468_s18 = smov [#allocation4]   ;;  %s18_s17 = int_to_ptr.hbm [resolvable:$true] %s17_s17 }
   0x3   :  { %s19_s19 = sshll.u32 %s1468_s18, 4  ;;  %s31_s22 = sshll.u32 %s1802_s1, 4  ;;  %s20_s19 = int_to_ptr.vmem [resolvable:$true] %s19_s19  ;;  %s32_s22 = int_to_ptr.hbm [resolvable:$true] %s31_s22 }
   0x4   :  { %s1469_s23 = smov 192   ;;  %s1470_s24 = smov 12  }
   0x5   :  { %25 = dma.hbm_to_vmem [thread:$0]  %s18_s17, 1536, %s20_s19, [#allocation5], %s1469_s23, %s1469_s23, %s1470_s24  }
   0x6   :  { %s1471_s25 = smov [#allocation7]  }
   0x7   :  { %s33_s26 = sshll.u32 %s1471_s25, 4  ;;  %s34_s26 = int_to_ptr.vmem [resolvable:$true] %s33_s26 }
   0x8   :  { %36 = dma.hbm_to_vmem [thread:$0]  %s32_s22, 256, %s34_s26, [#allocation8]  }
   0x9   :  { %1462 = dma.done.wait [#allocation5], 1536  }
   0xa   :  { %1463 = vsyncadd [#allocation5], 4294965760 }
   0xb   :  { %1464 = dma.done.wait [#allocation8], 256  }
   0xc   :  { %1465 = vsyncadd [#allocation8], 4294967040  ;;  %v1513_v0 = vld [vmem:[#allocation4 + $0xc] sm:$0xff]  ;;  %v1515_v1 = vld [vmem:[#allocation4] sm:$0xff]  ;;  %s1472_s0 = smov 127   ;;  %s1473_s1 = smov 107  }
   0xd   :  { %71 = vrot.lane.b32.xlu1 %v1513_v0, %s1472_s0  ;;  %67 = vrot.lane.b32.xlu0 %v1515_v1, %s1472_s0  ;;  %v1521_v2 = vld [vmem:[#allocation4 + $0x18] sm:$0xff]  ;;  %52 = vst [vmem:[#allocation2] sm:$0xff] %v1515_v1  ;;  %v1529_v4 = vld [vmem:[#allocation4 + $0x24] sm:$0xff]  ;;  %v62_v5 = vld [vmem:[#allocation4 + $0x14] sm:$0xf]  ;;  %s1474_s27 = smov 118  }
   0xe   :  { %97 = vrot.lane.b32.xlu2 %v1521_v2, %s1472_s0  ;;  %57 = vst [vmem:[#allocation2 + $0x10] sm:$0xff] %v1521_v2  ;;  %v1527_v3 = vld [vmem:[#allocation4 + $0x3c] sm:$0xff]  ;;  %v60_v6 = vld [vmem:[#allocation4 + $0x8] sm:$0xf]  ;;  %v1536_v8 = vld [vmem:[#allocation4 + $0x30] sm:$0xff]  ;;  %s1475_s28 = smov 108  }
   0xf   :  { %150 = vst [vmem:[#allocation2 + $0x58] sm:$0xff] %v1527_v3  ;;  %v90_v7 = vld [vmem:[#allocation4 + $0x20] sm:$0xf]  ;;  %v612_v10 = vld [vmem:[#allocation4 + $0x2c] sm:$0xf]  ;;  %s1476_s29 = smov 116  }
  0x10   :  { %58 = vst [vmem:[#allocation2 + $0x18] sm:$0xff] %v1529_v4  ;;  %v610_v9 = vld [vmem:[#allocation4 + $0x20] sm:$0xf]  ;;  %v157_v11 = vld [vmem:[#allocation4 + $0x38] sm:$0xf]  ;;  %s1477_s30 = smov 117  }
  0x11   :  { %53 = vst [vmem:[#allocation2 + $0x8] sm:$0xff] %v1513_v0  ;;  %v159_v12 = vld [vmem:[#allocation4 + $0x44] sm:$0xf]  ;;  %v581_v13 = vld [vmem:[#allocation4 + $0x8] sm:$0xf]  ;;  %vm79_vm0 = vcmask 1043456  }
  0x12   :  { %149 = vst [vmem:[#allocation2 + $0x50] sm:$0xff] %v1536_v8  ;;  %v583_v14 = vld [vmem:[#allocation4 + $0x14] sm:$0xf]  ;;  %v384_v15 = vld [vmem:[#allocation4 + $0x38] sm:$0xf]  ;;  %vm81_vm1 = vcmask 1039360  }
  0x13   :  { %v386_v16 = vld [vmem:[#allocation4 + $0x44] sm:$0xf]  ;;  %v553_v17 = vld [vmem:[#allocation4 + $0x20] sm:$0xf]  ;;  %v555_v18 = vld [vmem:[#allocation4 + $0x2c] sm:$0xf] }
  0x14   :  { %v355_v19 = vld [vmem:[#allocation4 + $0x8] sm:$0xf]  ;;  %v357_v20 = vld [vmem:[#allocation4 + $0x14] sm:$0xf]  ;;  %v327_v24 = vld [vmem:[#allocation4 + $0x20] sm:$0xf] }
  0x15   :  { %73 = vrot.lane.b32.xlu1 %v62_v5, %s1472_s0  ;;  %69 = vrot.lane.b32.xlu0 %v60_v6, %s1472_s0  ;;  %v524_v21 = vld [vmem:[#allocation4 + $0x8] sm:$0xf]  ;;  %v526_v22 = vld [vmem:[#allocation4 + $0x14] sm:$0xf]  ;;  %v329_v25 = vld [vmem:[#allocation4 + $0x2c] sm:$0xf] }
  0x16   :  { %99 = vrot.lane.b32.xlu2 %v90_v7, %s1472_s0  ;;  %v118_v29 = vld [vmem:[#allocation4 + $0x8] sm:$0xf]  ;;  %s1478_s5 = smov 126   ;;  %v120_v34 = vld [vmem:[#allocation4 + $0x14] sm:$0xf]  ;;  %vm601_vm2 = vcmask 875520  }
  0x17   :  { %v1579_v32 = vld [vmem:[#allocation4 + $0x48] sm:$0xff]  ;;  %v496_v35 = vld [vmem:[#allocation4 + $0x38] sm:$0xf]  ;;  %v498_v40 = vld [vmem:[#allocation4 + $0x44] sm:$0xf]  ;;  %s1479_s6 = smov 106  }
  0x18   :  { %154 = vst [vmem:[#allocation2 + $0x60] sm:$0xff] %v1579_v32  ;;  %v1587_v36 = vld [vmem:[#allocation4 + $0x54] sm:$0xff]  ;;  %v298_v50 = vld [vmem:[#allocation4 + $0x8] sm:$0xf]  ;;  %v92_v60 = vld [vmem:[#allocation4 + $0x2c] sm:$0xf] }
  0x19   :  { %155 = vst [vmem:[#allocation2 + $0x68] sm:$0xff] %v1587_v36  ;;  %v300_v53 = vld [vmem:[#allocation4 + $0x14] sm:$0xf]  ;;  %v468_v62 = vld [vmem:[#allocation4 + $0x50] sm:$0xf]  ;;  %vm261_vm3 = vcmask 965632  }
  0x1a   :  { %vm544_vm4 = vcmask 883712   ;;  %vm375_vm5 = vcmask 949248   ;;  %vm318_vm6 = vcmask 957440   ;;  %vm138_vm7 = vcmask 1031168   ;;  %s1481_s10 = smov [#allocation9]  }
  0x1b   :  { %vm658_vm8 = vcmask 867328   ;;  %vm987_vm9 = vcmask 130048   ;;  %s1110_s11 = sshll.u32 %s1481_s10, 4  ;;  %s1111_s11 = int_to_ptr.vmem [resolvable:$true] %s1110_s11 }
  0x1d   :  { %617 = vrot.lane.b32.xlu1 %v1521_v2, %s1473_s1  ;;  %101 = vrot.lane.b32.xlu0 %v1529_v4, %s1472_s0 }
  0x1e   :  { %619 = vrot.lane.b32.xlu2 %v610_v9, %s1473_s1 }
  0x25   :  { %623 = vrot.lane.b32.xlu1 %v612_v10, %s1473_s1  ;;  %621 = vrot.lane.b32.xlu0 %v1529_v4, %s1473_s1 }
  0x26   :  { %164 = vrot.lane.b32.xlu2 %v1536_v8, %s1472_s0 }
  0x2d   :  { %168 = vrot.lane.b32.xlu1 %v1527_v3, %s1472_s0  ;;  %166 = vrot.lane.b32.xlu0 %v157_v11, %s1472_s0  ;;  %v470_v11 = vld [vmem:[#allocation4 + $0x5c] sm:$0xf] }
  0x2e   :  { %170 = vrot.lane.b32.xlu2 %v159_v12, %s1472_s0 }
  0x35   :  { %590 = vrot.lane.b32.xlu1 %v581_v13, %s1473_s1  ;;  %588 = vrot.lane.b32.xlu0 %v1515_v1, %s1473_s1 }
  0x36   :  { %592 = vrot.lane.b32.xlu2 %v1513_v0, %s1473_s1 }
  0x3d   :  { %391 = vrot.lane.b32.xlu1 %v1536_v8, %s1474_s27  ;;  %594 = vrot.lane.b32.xlu0 %v583_v14, %s1473_s1 }
  0x3e   :  { %393 = vrot.lane.b32.xlu2 %v384_v15, %s1474_s27 }
  0x45   :  { %397 = vrot.lane.b32.xlu1 %v386_v16, %s1474_s27  ;;  %395 = vrot.lane.b32.xlu0 %v1527_v3, %s1474_s27 }
  0x46   :  { %560 = vrot.lane.b32.xlu2 %v1521_v2, %s1475_s28 }
  0x4d   :  { %564 = vrot.lane.b32.xlu1 %v1529_v4, %s1475_s28  ;;  %562 = vrot.lane.b32.xlu0 %v553_v17, %s1475_s28 }
  0x4e   :  { %566 = vrot.lane.b32.xlu2 %v555_v18, %s1475_s28 }
  0x55   :  { %364 = vrot.lane.b32.xlu1 %v355_v19, %s1476_s29  ;;  %362 = vrot.lane.b32.xlu0 %v1515_v1, %s1476_s29 }
  0x56   :  { %366 = vrot.lane.b32.xlu2 %v1513_v0, %s1476_s29 }
  0x5d   :  { %531 = vrot.lane.b32.xlu1 %v1515_v1, %s1475_s28  ;;  %368 = vrot.lane.b32.xlu0 %v357_v20, %s1476_s29 }
  0x5e   :  { %533 = vrot.lane.b32.xlu2 %v524_v21, %s1475_s28 }
  0x65   :  { %537 = vrot.lane.b32.xlu1 %v526_v22, %s1475_s28  ;;  %535 = vrot.lane.b32.xlu0 %v1513_v0, %s1475_s28  ;;  %v270_v22 = vld [vmem:[#allocation4 + $0x20] sm:$0xf] }
  0x66   :  { %334 = vrot.lane.b32.xlu2 %v1521_v2, %s1477_s30 }
  0x68   :  { %v98_v23 = vpop.permute.xlu2 %97 }
  0x69   :  { %v105_v26 = vrot.slane %v98_v23, 4 }
  0x6d   :  { %338 = vrot.lane.b32.xlu1 %v1529_v4, %s1477_s30  ;;  %336 = vrot.lane.b32.xlu0 %v327_v24, %s1477_s30 }
  0x6e   :  { %340 = vrot.lane.b32.xlu2 %v329_v25, %s1477_s30 }
  0x70   :  { %v100_v27 = vpop.permute.xlu2 %99 }
  0x71   :  { %v106_v28 = vrot.slane %v100_v27, 4  ;;  %v272_v27 = vld [vmem:[#allocation4 + $0x2c] sm:$0xf] }
  0x73   :  { %v109_v30 = vsel %vm79_vm0, %v105_v26, %v106_v28 }
  0x74   :  { %v110_v31 = vsel %vm81_vm1, %v98_v23, %v109_v30 }
  0x75   :  { %127 = vrot.lane.b32.xlu1 %v118_v29, %s1478_s5  ;;  %125 = vrot.lane.b32.xlu0 %v1515_v1, %s1478_s5  ;;  %115 = vst [vmem:[#allocation2 + $0x30] sm:$0xff] %v110_v31 }
  0x76   :  { %129 = vrot.lane.b32.xlu2 %v1513_v0, %s1478_s5 }
  0x78   :  { %v620_v33 = vpop.permute.xlu2 %619 }
  0x79   :  { %v626_v54 = vrot.slane %v620_v33, 4 }
  0x7d   :  { %503 = vrot.lane.b32.xlu1 %v1536_v8, %s1476_s29  ;;  %131 = vrot.lane.b32.xlu0 %v120_v34, %s1478_s5 }
  0x7e   :  { %505 = vrot.lane.b32.xlu2 %v496_v35, %s1476_s29  ;;  %v638_v35 = vld [vmem:[#allocation4 + $0x8] sm:$0xf] }
  0x7f   :  { %v72_v37 = vpop.permute.xlu1 %71  ;;  %v68_v38 = vpop.permute.xlu0 %67 }
  0x80   :  { %v165_v39 = vpop.permute.xlu2 %164  ;;  %v77_v43 = vrot.slane %v72_v37, 4  ;;  %v75_v44 = vrot.slane %v68_v38, 4 }
  0x81   :  { %v172_v16 = vrot.slane %v165_v39, 4 }
  0x85   :  { %509 = vrot.lane.b32.xlu1 %v498_v40, %s1476_s29  ;;  %507 = vrot.lane.b32.xlu0 %v1527_v3, %s1476_s29 }
  0x86   :  { %305 = vrot.lane.b32.xlu2 %v1515_v1, %s1477_s30 }
  0x87   :  { %v74_v41 = vpop.permute.xlu1 %73  ;;  %v70_v42 = vpop.permute.xlu0 %69 }
  0x88   :  { %v78_v45 = vrot.slane %v74_v41, 4  ;;  %v76_v46 = vrot.slane %v70_v42, 4  ;;  %v171_v47 = vpop.permute.xlu2 %170 }
  0x89   :  { %v175_v13 = vrot.slane %v171_v47, 4 }
  0x8a   :  { %v83_v48 = vsel %vm79_vm0, %v77_v43, %v78_v45  ;;  %v80_v49 = vsel %vm79_vm0, %v75_v44, %v76_v46 }
  0x8b   :  { %v84_v51 = vsel %vm81_vm1, %v72_v37, %v83_v48  ;;  %v82_v52 = vsel %vm81_vm1, %v68_v38, %v80_v49  ;;  %v640_v49 = vld [vmem:[#allocation4 + $0x14] sm:$0xf] }
  0x8c   :  { %88 = vst [vmem:[#allocation2 + $0x28] sm:$0xff] %v84_v51 }
  0x8d   :  { %87 = vst [vmem:[#allocation2 + $0x20] sm:$0xff] %v82_v52  ;;  %309 = vrot.lane.b32.xlu1 %v1513_v0, %s1477_s30  ;;  %307 = vrot.lane.b32.xlu0 %v298_v50, %s1477_s30  ;;  %v440_v52 = vld [vmem:[#allocation4 + $0x38] sm:$0xf] }
  0x8e   :  { %311 = vrot.lane.b32.xlu2 %v300_v53, %s1477_s30 }
  0x8f   :  { %v618_v55 = vpop.permute.xlu1 %617  ;;  %v1604_v56 = vpop.permute.xlu0 %101 }
  0x90   :  { %v625_v57 = vrot.slane %v618_v55, 4  ;;  %v1606_v58 = vpop.permute.xlu2 %592 }
  0x91   :  { %v598_v43 = vrot.slane %v1606_v58, 4 }
  0x92   :  { %v629_v59 = vsel %vm79_vm0, %v625_v57, %v626_v54 }
  0x93   :  { %v630_v61 = vsel %vm601_vm2, %v618_v55, %v629_v59 }
  0x94   :  { %635 = vst [vmem:[#allocation2 + $0x170] sm:$0xff] %v630_v61  ;;  %v442_v61 = vld [vmem:[#allocation4 + $0x44] sm:$0xf] }
  0x95   :  { %475 = vrot.lane.b32.xlu1 %v1579_v32, %s1477_s30  ;;  %103 = vrot.lane.b32.xlu0 %v92_v60, %s1472_s0 }
  0x96   :  { %477 = vrot.lane.b32.xlu2 %v468_v62, %s1477_s30 }
  0x97   :  { %v624_v63 = vpop.permute.xlu1 %623  ;;  %v622_v5 = vpop.permute.xlu0 %621 }
  0x98   :  { %v628_v6 = vrot.slane %v624_v63, 4  ;;  %v627_v7 = vrot.slane %v622_v5, 4  ;;  %v394_v9 = vpop.permute.xlu2 %393 }
  0x99   :  { %v400_v40 = vrot.slane %v394_v9, 4 }
  0x9a   :  { %v631_v10 = vsel %vm79_vm0, %v627_v7, %v628_v6 }
  0x9b   :  { %v632_v12 = vsel %vm601_vm2, %v622_v5, %v631_v10  ;;  %v1309_v25 = vld [vmem:[#allocation2 + $0x170] sm:$0xf] }
  0x9c   :  { %636 = vst [vmem:[#allocation2 + $0x178] sm:$0xff] %v632_v12 }
  0x9d   :  { %481 = vrot.lane.b32.xlu1 %v470_v11, %s1477_s30  ;;  %479 = vrot.lane.b32.xlu0 %v1587_v36, %s1477_s30 }
  0x9e   :  { %277 = vrot.lane.b32.xlu2 %v1521_v2, %s1474_s27 }
  0x9f   :  { %v169_v14 = vpop.permute.xlu1 %168  ;;  %v167_v15 = vpop.permute.xlu0 %166 }
  0xa0   :  { %v174_v17 = vrot.slane %v169_v14, 4  ;;  %v173_v18 = vrot.slane %v167_v15, 4  ;;  %v1621_v19 = vpop.permute.xlu2 %560 }
  0xa1   :  { %v568_v10 = vrot.slane %v1621_v19, 4 }
  0xa2   :  { %v178_v20 = vsel %vm79_vm0, %v174_v17, %v175_v13  ;;  %v176_v21 = vsel %vm79_vm0, %v172_v16, %v173_v18  ;;  %v241_v16 = vld [vmem:[#allocation4 + $0x8] sm:$0xf] }
  0xa3   :  { %v179_v23 = vsel %vm81_vm1, %v169_v14, %v178_v20  ;;  %v177_v24 = vsel %vm81_vm1, %v165_v39, %v176_v21  ;;  %v1372_v26 = vld [vmem:[#allocation2 + $0x174] sm:$0xf0]  ;;  %v243_v21 = vld [vmem:[#allocation4 + $0x14] sm:$0xf] }
  0xa4   :  { %183 = vst [vmem:[#allocation2 + $0x78] sm:$0xff] %v179_v23  ;;  %v1310_v2 = vor.u32 %v1372_v26, %v1309_v25 }
  0xa5   :  { %182 = vst [vmem:[#allocation2 + $0x70] sm:$0xff] %v177_v24  ;;  %281 = vrot.lane.b32.xlu1 %v1529_v4, %s1474_s27  ;;  %279 = vrot.lane.b32.xlu0 %v270_v22, %s1474_s27 }
  0xa6   :  { %1017 = vmatpush.bf16.msra.mxu2 %v1310_v2  ;;  %283 = vrot.lane.b32.xlu2 %v272_v27, %s1474_s27  ;;  %v412_v2 = vld [vmem:[#allocation4 + $0x50] sm:$0xf] }
  0xa7   :  { %v591_v28 = vpop.permute.xlu1 %590  ;;  %v589_v29 = vpop.permute.xlu0 %588 }
  0xa8   :  { %v597_v30 = vrot.slane %v591_v28, 4  ;;  %v596_v31 = vrot.slane %v589_v29, 4  ;;  %v567_v33 = vpop.permute.xlu2 %566 }
  0xa9   :  { %v571_v6 = vrot.slane %v567_v33, 4 }
  0xaa   :  { %v600_v34 = vsel %vm79_vm0, %v596_v31, %v597_v30 }
  0xab   :  { %v602_v37 = vsel %vm601_vm2, %v589_v29, %v600_v34  ;;  %v1340_v38 = vld [vmem:[#allocation2 + $0x74] sm:$0xf0] }
  0xac   :  { %607 = vst [vmem:[#allocation2 + $0x160] sm:$0xff] %v602_v37  ;;  %v1181_v39 = vld [vmem:[#allocation2 + $0x70] sm:$0xf] }
  0xad   :  { %647 = vrot.lane.b32.xlu1 %v638_v35, %s1479_s6  ;;  %645 = vrot.lane.b32.xlu0 %v1515_v1, %s1479_s6  ;;  %v1182_v4 = vor.u32 %v1340_v38, %v1181_v39 }
  0xae   :  { %649 = vrot.lane.b32.xlu2 %v1513_v0, %s1479_s6 }
  0xaf   :  { %991 = vmatpush.bf16.msra.mxu0 %v1182_v4  ;;  %v392_v41 = vpop.permute.xlu1 %391  ;;  %v595_v42 = vpop.permute.xlu0 %594 }
  0xb0   :  { %v399_v44 = vrot.slane %v392_v41, 4  ;;  %v599_v45 = vrot.slane %v595_v42, 4  ;;  %v1636_v46 = vpop.permute.xlu2 %366 }
  0xb1   :  { %v372_v35 = vrot.slane %v1636_v46, 4 }
  0xb2   :  { %v403_v47 = vsel %vm79_vm0, %v399_v44, %v400_v40  ;;  %v603_v48 = vsel %vm79_vm0, %v598_v43, %v599_v45  ;;  %v213_v44 = vld [vmem:[#allocation4 + $0x38] sm:$0xf]  ;;  %v1173_v45 = vld [vmem:[#allocation2 + $0x60] sm:$0xf] }
  0xb3   :  { %v404_v50 = vsel %vm261_vm3, %v392_v41, %v403_v47  ;;  %v604_v51 = vsel %vm601_vm2, %v1606_v58, %v603_v48  ;;  %v1301_v58 = vld [vmem:[#allocation2 + $0x160] sm:$0xf]  ;;  %v414_v41 = vld [vmem:[#allocation4 + $0x5c] sm:$0xf]  ;;  %v1338_v47 = vld [vmem:[#allocation2 + $0x64] sm:$0xf0] }
  0xb4   :  { %409 = vst [vmem:[#allocation2 + $0xf0] sm:$0xff] %v404_v50  ;;  %v1174_v48 = vor.u32 %v1338_v47, %v1173_v45 }
  0xb5   :  { %608 = vst [vmem:[#allocation2 + $0x168] sm:$0xff] %v604_v51  ;;  %447 = vrot.lane.b32.xlu1 %v1536_v8, %s1477_s30  ;;  %651 = vrot.lane.b32.xlu0 %v640_v49, %s1479_s6 }
  0xb6   :  { %449 = vrot.lane.b32.xlu2 %v440_v52, %s1477_s30  ;;  %992 = vmatpush.bf16.msra.mxu0 %v1174_v48 }
  0xb7   :  { %v398_v53 = vpop.permute.xlu1 %397  ;;  %v396_v54 = vpop.permute.xlu0 %395 }
  0xb8   :  { %v402_v55 = vrot.slane %v398_v53, 4  ;;  %v401_v57 = vrot.slane %v396_v54, 4  ;;  %v534_v59 = vpop.permute.xlu2 %533 }
  0xb9   :  { %v540_v31 = vrot.slane %v534_v59, 4  ;;  %v215_v59 = vld [vmem:[#allocation4 + $0x44] sm:$0xf] }
  0xba   :  { %v405_v60 = vsel %vm79_vm0, %v401_v57, %v402_v55 }
  0xbb   :  { %v406_v62 = vsel %vm261_vm3, %v396_v54, %v405_v60  ;;  %v1245_v18 = vld [vmem:[#allocation2 + $0xf0] sm:$0xf]  ;;  %v1336_v54 = vld [vmem:[#allocation2 + $0x54] sm:$0xf0] }
  0xbc   :  { %410 = vst [vmem:[#allocation2 + $0xf8] sm:$0xff] %v406_v62  ;;  %v1370_v63 = vld [vmem:[#allocation2 + $0x164] sm:$0xf0] }
  0xbd   :  { %453 = vrot.lane.b32.xlu1 %v442_v61, %s1477_s30  ;;  %451 = vrot.lane.b32.xlu0 %v1527_v3, %s1477_s30  ;;  %v1302_v5 = vor.u32 %v1370_v63, %v1301_v58 }
  0xbe   :  { %248 = vrot.lane.b32.xlu2 %v1515_v1, %s1474_s27 }
  0xbf   :  { %1018 = vmatpush.bf16.msra.mxu2 %v1302_v5  ;;  %v565_v7 = vpop.permute.xlu1 %564  ;;  %v563_v9 = vpop.permute.xlu0 %562 }
  0xc0   :  { %v570_v11 = vrot.slane %v565_v7, 4  ;;  %v569_v12 = vrot.slane %v563_v9, 4  ;;  %v1654_v13 = vpop.permute.xlu2 %334 }
  0xc2   :  { %v574_v14 = vsel %vm79_vm0, %v570_v11, %v571_v6  ;;  %v572_v15 = vsel %vm79_vm0, %v568_v10, %v569_v12  ;;  %v342_v6 = vrot.slane %v1654_v13, 4  ;;  %v185_v12 = vld [vmem:[#allocation4 + $0x50] sm:$0xf] }
  0xc3   :  { %v575_v17 = vsel %vm544_vm4, %v565_v7, %v574_v14  ;;  %v573_v1 = vsel %vm544_vm4, %v1621_v19, %v572_v15  ;;  %v1356_v20 = vld [vmem:[#allocation2 + $0xf4] sm:$0xf0] }
  0xc4   :  { %579 = vst [vmem:[#allocation2 + $0x158] sm:$0xff] %v575_v17  ;;  %v1246_v22 = vor.u32 %v1356_v20, %v1245_v18  ;;  %v187_v17 = vld [vmem:[#allocation4 + $0x5c] sm:$0xf] }
  0xc5   :  { %578 = vst [vmem:[#allocation2 + $0x150] sm:$0xff] %v573_v1  ;;  %252 = vrot.lane.b32.xlu1 %v1513_v0, %s1474_s27  ;;  %250 = vrot.lane.b32.xlu0 %v241_v16, %s1474_s27 }
  0xc6   :  { %1004 = vmatpush.bf16.msra.mxu1 %v1246_v22  ;;  %254 = vrot.lane.b32.xlu2 %v243_v21, %s1474_s27 }
  0xc7   :  { %v365_v23 = vpop.permute.xlu1 %364  ;;  %v363_v24 = vpop.permute.xlu0 %362 }
  0xc8   :  { %v371_v25 = vrot.slane %v365_v23, 4  ;;  %v370_v26 = vrot.slane %v363_v24, 4  ;;  %v1665_v19 = vpop.permute.xlu2 %340 }
  0xc9   :  { %v345_v58 = vrot.slane %v1665_v19, 4 }
  0xca   :  { %v374_v27 = vsel %vm79_vm0, %v370_v26, %v371_v25 }
  0xcb   :  { %v376_v28 = vsel %vm375_vm5, %v363_v24, %v374_v27  ;;  %v1368_v29 = vld [vmem:[#allocation2 + $0x154] sm:$0xf0] }
  0xcc   :  { %381 = vst [vmem:[#allocation2 + $0xe0] sm:$0xff] %v376_v28  ;;  %v1293_v0 = vld [vmem:[#allocation2 + $0x150] sm:$0xf] }
  0xcd   :  { %421 = vrot.lane.b32.xlu1 %v412_v2, %s1474_s27  ;;  %419 = vrot.lane.b32.xlu0 %v1579_v32, %s1474_s27  ;;  %v1294_v30 = vor.u32 %v1368_v29, %v1293_v0 }
  0xce   :  { %423 = vrot.lane.b32.xlu2 %v1587_v36, %s1474_s27 }
  0xcf   :  { %1019 = vmatpush.bf16.msra.mxu2 %v1294_v30  ;;  %v532_v33 = vpop.permute.xlu1 %531  ;;  %v369_v34 = vpop.permute.xlu0 %368 }
  0xd0   :  { %v539_v37 = vrot.slane %v532_v33, 4  ;;  %v373_v38 = vrot.slane %v369_v34, 4  ;;  %v1675_v39 = vpop.permute.xlu2 %129 }
  0xd1   :  { %v135_v28 = vrot.slane %v1675_v39, 4 }
  0xd2   :  { %v543_v4 = vsel %vm79_vm0, %v539_v37, %v540_v31  ;;  %v377_v40 = vsel %vm79_vm0, %v372_v35, %v373_v38 }
  0xd3   :  { %v545_v42 = vsel %vm544_vm4, %v532_v33, %v543_v4  ;;  %v378_v43 = vsel %vm375_vm5, %v1636_v46, %v377_v40  ;;  %v1165_v46 = vld [vmem:[#allocation2 + $0x50] sm:$0xf] }
  0xd4   :  { %550 = vst [vmem:[#allocation2 + $0x140] sm:$0xff] %v545_v42  ;;  %v1166_v55 = vor.u32 %v1336_v54, %v1165_v46 }
  0xd5   :  { %382 = vst [vmem:[#allocation2 + $0xe8] sm:$0xff] %v378_v43  ;;  %220 = vrot.lane.b32.xlu1 %v1536_v8, %s1478_s5  ;;  %425 = vrot.lane.b32.xlu0 %v414_v41, %s1474_s27  ;;  %v1237_v8 = vld [vmem:[#allocation2 + $0xe0] sm:$0xf] }
  0xd6   :  { %222 = vrot.lane.b32.xlu2 %v213_v44, %s1478_s5  ;;  %993 = vmatpush.bf16.msra.mxu0 %v1166_v55 }
  0xd7   :  { %v538_v49 = vpop.permute.xlu1 %537  ;;  %v536_v50 = vpop.permute.xlu0 %535 }
  0xd8   :  { %v542_v51 = vrot.slane %v538_v49, 4  ;;  %v541_v52 = vrot.slane %v536_v50, 4  ;;  %v506_v53 = vpop.permute.xlu2 %505 }
  0xda   :  { %v546_v57 = vsel %vm79_vm0, %v541_v52, %v542_v51 }
  0xdb   :  { %v547_v60 = vsel %vm544_vm4, %v536_v50, %v546_v57  ;;  %v1285_v15 = vld [vmem:[#allocation2 + $0x140] sm:$0xf] }
  0xdc   :  { %551 = vst [vmem:[#allocation2 + $0x148] sm:$0xff] %v547_v60  ;;  %v1354_v61 = vld [vmem:[#allocation2 + $0xe4] sm:$0xf0] }
  0xdd   :  { %226 = vrot.lane.b32.xlu1 %v215_v59, %s1478_s5  ;;  %224 = vrot.lane.b32.xlu0 %v1527_v3, %s1478_s5  ;;  %v1238_v62 = vor.u32 %v1354_v61, %v1237_v8 }
  0xde   :  { %192 = vrot.lane.b32.xlu2 %v1579_v32, %s1472_s0 }
  0xdf   :  { %1005 = vmatpush.bf16.msra.mxu1 %v1238_v62  ;;  %v339_v63 = vpop.permute.xlu1 %338  ;;  %v337_v5 = vpop.permute.xlu0 %336 }
  0xe0   :  { %v344_v7 = vrot.slane %v339_v63, 4  ;;  %v343_v9 = vrot.slane %v337_v5, 4  ;;  %v1695_v10 = vpop.permute.xlu2 %305 }
  0xe1   :  { %v313_v50 = vrot.slane %v1695_v10, 4 }
  0xe2   :  { %v348_v11 = vsel %vm79_vm0, %v344_v7, %v345_v58  ;;  %v346_v3 = vsel %vm79_vm0, %v342_v6, %v343_v9 }
  0xe3   :  { %v349_v14 = vsel %vm318_vm6, %v339_v63, %v348_v11  ;;  %v347_v32 = vsel %vm318_vm6, %v1654_v13, %v346_v3  ;;  %v1366_v16 = vld [vmem:[#allocation2 + $0x144] sm:$0xf0]  ;;  %v107_v63 = vrot.slane %v1604_v56, 4 }
  0xe4   :  { %353 = vst [vmem:[#allocation2 + $0xd8] sm:$0xff] %v349_v14  ;;  %v1286_v1 = vor.u32 %v1366_v16, %v1285_v15 }
  0xe5   :  { %352 = vst [vmem:[#allocation2 + $0xd0] sm:$0xff] %v347_v32  ;;  %196 = vrot.lane.b32.xlu1 %v1587_v36, %s1472_s0  ;;  %194 = vrot.lane.b32.xlu0 %v185_v12, %s1472_s0  ;;  %v512_v36 = vrot.slane %v506_v53, 4 }
  0xe6   :  { %1020 = vmatpush.bf16.msra.mxu2 %v1286_v1  ;;  %198 = vrot.lane.b32.xlu2 %v187_v17, %s1472_s0 }
  0xe7   :  { %v128_v18 = vpop.permute.xlu1 %127  ;;  %v126_v20 = vpop.permute.xlu0 %125 }
  0xe8   :  { %v134_v21 = vrot.slane %v128_v18, 4  ;;  %v133_v22 = vrot.slane %v126_v20, 4  ;;  %v312_v13 = vpop.permute.xlu2 %311 }
  0xe9   :  { %v316_v48 = vrot.slane %v312_v13, 4 }
  0xea   :  { %v137_v23 = vsel %vm79_vm0, %v133_v22, %v134_v21  ;;  %v1149_v21 = vld [vmem:[#allocation2 + $0x30] sm:$0xf] }
  0xeb   :  { %v139_v24 = vsel %vm138_vm7, %v126_v20, %v137_v23  ;;  %v1352_v25 = vld [vmem:[#allocation2 + $0xd4] sm:$0xf0]  ;;  %v1141_v23 = vld [vmem:[#allocation2 + $0x20] sm:$0xf] }
  0xec   :  { %144 = vst [vmem:[#allocation2 + $0x40] sm:$0xff] %v139_v24  ;;  %v1229_v26 = vld [vmem:[#allocation2 + $0xd0] sm:$0xf]  ;;  %v1330_v24 = vld [vmem:[#allocation2 + $0x24] sm:$0xf0] }
  0xed   :  { %v1230_v19 = vor.u32 %v1352_v25, %v1229_v26 }
  0xef   :  { %1006 = vmatpush.bf16.msra.mxu1 %v1230_v19  ;;  %v504_v27 = vpop.permute.xlu1 %503  ;;  %v132_v2 = vpop.permute.xlu0 %131 }
  0xf0   :  { %v511_v29 = vrot.slane %v504_v27, 4  ;;  %v136_v0 = vrot.slane %v132_v2, 4  ;;  %v478_v30 = vpop.permute.xlu2 %477 }
  0xf1   :  { %v484_v61 = vrot.slane %v478_v30, 4 }
  0xf2   :  { %v515_v31 = vsel %vm79_vm0, %v511_v29, %v512_v36  ;;  %v140_v33 = vsel %vm79_vm0, %v135_v28, %v136_v0  ;;  %v1133_v28 = vld [vmem:[#allocation2 + $0x10] sm:$0xf]  ;;  %v1328_v29 = vld [vmem:[#allocation2 + $0x14] sm:$0xf0]  ;;  %v1142_v0 = vor.u32 %v1330_v24, %v1141_v23  ;;  %v1339_v24 = vld [vmem:[#allocation2 + $0x74] sm:$0xf] }
  0xf3   :  { %v516_v34 = vsel %vm375_vm5, %v504_v27, %v515_v31  ;;  %v141_v35 = vsel %vm138_vm7, %v1675_v39, %v140_v33  ;;  %v1157_v44 = vld [vmem:[#allocation2 + $0x40] sm:$0xf] }
  0xf4   :  { %521 = vst [vmem:[#allocation2 + $0x130] sm:$0xff] %v516_v34 }
  0xf5   :  { %145 = vst [vmem:[#allocation2 + $0x48] sm:$0xff] %v141_v35  ;;  %v1134_v35 = vor.u32 %v1328_v29, %v1133_v28 }
  0xf7   :  { %v510_v37 = vpop.permute.xlu1 %509  ;;  %v508_v38 = vpop.permute.xlu0 %507 }
  0xf8   :  { %v514_v4 = vrot.slane %v510_v37, 4  ;;  %v513_v40 = vrot.slane %v508_v38, 4  ;;  %v1714_v41 = vpop.permute.xlu2 %277 }
  0xf9   :  { %v285_v26 = vrot.slane %v1714_v41, 4 }
  0xfa   :  { %v517_v42 = vsel %vm79_vm0, %v513_v40, %v514_v4  ;;  %v1125_v40 = vld [vmem:[#allocation2] sm:$0xf] }
  0xfb   :  { %v518_v43 = vsel %vm375_vm5, %v508_v38, %v517_v42  ;;  %v1277_v59 = vld [vmem:[#allocation2 + $0x130] sm:$0xf]  ;;  %v1326_v42 = vld [vmem:[#allocation2 + $0x4] sm:$0xf0] }
  0xfc   :  { %522 = vst [vmem:[#allocation2 + $0x138] sm:$0xff] %v518_v43  ;;  %v1334_v45 = vld [vmem:[#allocation2 + $0x44] sm:$0xf0] }
  0xfd   :  { %v1158_v47 = vor.u32 %v1334_v45, %v1157_v44  ;;  %v1126_v45 = vor.u32 %v1326_v42, %v1125_v40 }
  0xff   :  { %994 = vmatpush.bf16.msra.mxu0 %v1158_v47  ;;  %v310_v49 = vpop.permute.xlu1 %309  ;;  %v308_v39 = vpop.permute.xlu0 %307  ;;  %v1247_v47 = vld [vmem:[#allocation2 + $0xf8] sm:$0xf0] }
 0x100   :  { %v315_v51 = vrot.slane %v310_v49, 4  ;;  %v314_v52 = vrot.slane %v308_v39, 4  ;;  %v284_v54 = vpop.permute.xlu2 %283 }
 0x101   :  { %v288_v13 = vrot.slane %v284_v54, 4 }
 0x102   :  { %v320_v53 = vsel %vm79_vm0, %v315_v51, %v316_v48  ;;  %v317_v46 = vsel %vm79_vm0, %v313_v50, %v314_v52 }
 0x103   :  { %v321_v55 = vsel %vm318_vm6, %v310_v49, %v320_v53  ;;  %v319_v57 = vsel %vm318_vm6, %v1695_v10, %v317_v46  ;;  %v1364_v60 = vld [vmem:[#allocation2 + $0x134] sm:$0xf0]  ;;  %v1239_v46 = vld [vmem:[#allocation2 + $0xe8] sm:$0xf0] }
 0x104   :  { %325 = vst [vmem:[#allocation2 + $0xc8] sm:$0xff] %v321_v55  ;;  %v1278_v8 = vor.u32 %v1364_v60, %v1277_v59 }
 0x105   :  { %324 = vst [vmem:[#allocation2 + $0xc0] sm:$0xff] %v319_v57  ;;  %v1353_v57 = vld [vmem:[#allocation2 + $0xe4] sm:$0xf] }
 0x106   :  { %1021 = vmatpush.bf16.msra.mxu2 %v1278_v8  ;;  %v1242_v60 = vor.u32 %v1353_v57, %v1239_v46 }
 0x107   :  { %v476_v62 = vpop.permute.xlu1 %475  ;;  %v104_v58 = vpop.permute.xlu0 %103 }
 0x108   :  { %v483_v5 = vrot.slane %v476_v62, 4  ;;  %v108_v6 = vrot.slane %v104_v58, 4  ;;  %v1730_v14 = vpop.permute.xlu2 %649  ;;  %v1231_v58 = vld [vmem:[#allocation2 + $0xd8] sm:$0xf0] }
 0x10a   :  { %v487_v7 = vsel %vm79_vm0, %v483_v5, %v484_v61  ;;  %v111_v9 = vsel %vm79_vm0, %v107_v63, %v108_v6  ;;  %v655_v63 = vrot.slane %v1730_v14, 4 }
 0x10b   :  { %v488_v11 = vsel %vm318_vm6, %v476_v62, %v487_v7  ;;  %v112_v10 = vsel %vm81_vm1, %v1604_v56, %v111_v9  ;;  %v1350_v3 = vld [vmem:[#allocation2 + $0xc4] sm:$0xf0]  ;;  %v1351_v62 = vld [vmem:[#allocation2 + $0xd4] sm:$0xf] }
 0x10c   :  { %493 = vst [vmem:[#allocation2 + $0x120] sm:$0xff] %v488_v11  ;;  %v1221_v12 = vld [vmem:[#allocation2 + $0xc0] sm:$0xf]  ;;  %v1234_v11 = vor.u32 %v1351_v62, %v1231_v58 }
 0x10d   :  { %116 = vst [vmem:[#allocation2 + $0x38] sm:$0xff] %v112_v10  ;;  %v1222_v32 = vor.u32 %v1350_v3, %v1221_v12 }
 0x10f   :  { %1007 = vmatpush.bf16.msra.mxu1 %v1222_v32  ;;  %v482_v15 = vpop.permute.xlu1 %481  ;;  %v480_v16 = vpop.permute.xlu0 %479  ;;  %v1349_v32 = vld [vmem:[#allocation2 + $0xc4] sm:$0xf] }
 0x110   :  { %v486_v17 = vrot.slane %v482_v15, 4  ;;  %v485_v1 = vrot.slane %v480_v16, 4  ;;  %v450_v25 = vpop.permute.xlu2 %449  ;;  %v1223_v15 = vld [vmem:[#allocation2 + $0xc8] sm:$0xf0] }
 0x111   :  { %v456_v59 = vrot.slane %v450_v25, 4 }
 0x112   :  { %v489_v18 = vsel %vm79_vm0, %v485_v1, %v486_v17 }
 0x113   :  { %v490_v20 = vsel %vm318_vm6, %v480_v16, %v489_v18  ;;  %v1269_v37 = vld [vmem:[#allocation2 + $0x120] sm:$0xf]  ;;  %v1226_v16 = vor.u32 %v1349_v32, %v1223_v15  ;;  %v1143_v32 = vld [vmem:[#allocation2 + $0x28] sm:$0xf0]  ;;  %v1769_v15 = vld [vmem:[#allocation7] sm:$0xff] }
 0x114   :  { %494 = vst [vmem:[#allocation2 + $0x128] sm:$0xff] %v490_v20  ;;  %v1332_v22 = vld [vmem:[#allocation2 + $0x34] sm:$0xf0]  ;;  %v1151_v62 = vld [vmem:[#allocation2 + $0x38] sm:$0xf0] }
 0x115   :  { %v1150_v56 = vor.u32 %v1332_v22, %v1149_v21 }
 0x117   :  { %995 = vmatpush.bf16.msra.mxu0 %v1150_v56  ;;  %v282_v19 = vpop.permute.xlu1 %281  ;;  %v280_v36 = vpop.permute.xlu0 %279 }
 0x118   :  { %v287_v27 = vrot.slane %v282_v19, 4  ;;  %v286_v2 = vrot.slane %v280_v36, 4  ;;  %v1740_v39 = vpop.permute.xlu2 %248 }
 0x11a   :  { %v291_v30 = vsel %vm79_vm0, %v287_v27, %v288_v13  ;;  %v289_v31 = vsel %vm79_vm0, %v285_v26, %v286_v2  ;;  %v1337_v27 = vld [vmem:[#allocation2 + $0x64] sm:$0xf]  ;;  %v1175_v2 = vld [vmem:[#allocation2 + $0x68] sm:$0xf0] }
 0x11b   :  { %v292_v33 = vsel %vm261_vm3, %v282_v19, %v291_v30  ;;  %v290_v34 = vsel %vm261_vm3, %v1714_v41, %v289_v31  ;;  %996 = vmatpush.bf16.msra.mxu0 %v1142_v0  ;;  %v1362_v38 = vld [vmem:[#allocation2 + $0x124] sm:$0xf0]  ;;  %v1355_v41 = vld [vmem:[#allocation2 + $0xf4] sm:$0xf]  ;;  %v256_v31 = vrot.slane %v1740_v39, 4 }
 0x11c   :  { %296 = vst [vmem:[#allocation2 + $0xb8] sm:$0xff] %v292_v33  ;;  %v1270_v4 = vor.u32 %v1362_v38, %v1269_v37  ;;  %v1250_v51 = vor.u32 %v1355_v41, %v1247_v47  ;;  %v1335_v37 = vld [vmem:[#allocation2 + $0x54] sm:$0xf]  ;;  %v1167_v38 = vld [vmem:[#allocation2 + $0x58] sm:$0xf0] }
 0x11d   :  { %295 = vst [vmem:[#allocation2 + $0xb0] sm:$0xff] %v290_v34  ;;  %v1760_v41 = vld [vmem:[#allocation7 + $0x8] sm:$0xff] }
 0x11e   :  { %1022 = vmatpush.bf16.msra.mxu2 %v1270_v4 }
 0x11f   :  { %997 = vmatpush.bf16.msra.mxu0 %v1134_v35  ;;  %v648_v43 = vpop.permute.xlu1 %647  ;;  %v646_v44 = vpop.permute.xlu0 %645  ;;  %v1178_v35 = vor.u32 %v1337_v27, %v1175_v2 }
 0x120   :  { %v654_v48 = vrot.slane %v648_v43, 4  ;;  %v653_v49 = vrot.slane %v646_v44, 4  ;;  %v255_v10 = vpop.permute.xlu2 %254 }
 0x121   :  { %v259_v28 = vrot.slane %v255_v10, 4 }
 0x122   :  { %v657_v50 = vsel %vm79_vm0, %v653_v49, %v654_v48  ;;  %v1170_v48 = vor.u32 %v1335_v37, %v1167_v38 }
 0x123   :  { %v659_v52 = vsel %vm658_vm8, %v646_v44, %v657_v50  ;;  %998 = vmatpush.bf16.msra.mxu0 %v1126_v45  ;;  %v1348_v53 = vld [vmem:[#allocation2 + $0xb4] sm:$0xf0]  ;;  %v1215_v20 = vld [vmem:[#allocation2 + $0xb8] sm:$0xf0] }
 0x124   :  { %664 = vst [vmem:[#allocation2 + $0x180] sm:$0xff] %v659_v52  ;;  %v1213_v54 = vld [vmem:[#allocation2 + $0xb0] sm:$0xf]  ;;  %v1347_v18 = vld [vmem:[#allocation2 + $0xb4] sm:$0xf] }
 0x125   :  { %v1214_v55 = vor.u32 %v1348_v53, %v1213_v54  ;;  %v1218_v13 = vor.u32 %v1347_v18, %v1215_v20  ;;  %v1159_v52 = vld [vmem:[#allocation2 + $0x48] sm:$0xf0]  ;;  %v729_v53 = vunpack.c.h.b16 %v1760_v41  ;;  %v726_v18 = vunpack.c.l.b16 %v1769_v15 }
 0x127   :  { %1056 = vmatpush.bf16.msrb.mxu0 %v1250_v51  ;;  %1008 = vmatpush.bf16.msra.mxu1 %v1214_v55  ;;  %v448_v8 = vpop.permute.xlu1 %447  ;;  %v652_v61 = vpop.permute.xlu0 %651  ;;  %v1763_v55 = vpack.c.b16 %v729_v53, %v729_v53 }
 0x128   :  { %v455_v5 = vrot.slane %v448_v8, 4  ;;  %v656_v6 = vrot.slane %v652_v61, 4  ;;  %v1752_v19 = vpop.permute.xlu2 %423 }
 0x12a   :  { %v459_v7 = vsel %vm79_vm0, %v455_v5, %v456_v59  ;;  %v660_v9 = vsel %vm79_vm0, %v655_v63, %v656_v6 }
 0x12b   :  { %1057 = vmatpush.bf16.msrb.mxu0 %v1242_v60  ;;  %v460_v3 = vsel %vm318_vm6, %v448_v8, %v459_v7  ;;  %v661_v12 = vsel %vm658_vm8, %v1730_v14, %v660_v9  ;;  %v1183_v14 = vld [vmem:[#allocation2 + $0x78] sm:$0xf0]  ;;  %v1317_v25 = vld [vmem:[#allocation2 + $0x180] sm:$0xf]  ;;  %v1331_v7 = vld [vmem:[#allocation2 + $0x34] sm:$0xf] }
 0x12c   :  { %465 = vst [vmem:[#allocation2 + $0x110] sm:$0xff] %v460_v3  ;;  %v1186_v29 = vor.u32 %v1339_v24, %v1183_v14  ;;  %v1327_v14 = vld [vmem:[#allocation2 + $0x14] sm:$0xf] }
 0x12d   :  { %665 = vst [vmem:[#allocation2 + $0x188] sm:$0xff] %v661_v12  ;;  %v1329_v12 = vld [vmem:[#allocation2 + $0x24] sm:$0xf] }
 0x12f   :  { %1058 = vmatpush.bf16.msrb.mxu0 %v1234_v11  ;;  %v454_v17 = vpop.permute.xlu1 %453  ;;  %v452_v1 = vpop.permute.xlu0 %451  ;;  %v1154_v11 = vor.u32 %v1331_v7, %v1151_v62  ;;  %v727_v62 = vunpack.c.h.b16 %v1769_v15  ;;  %v1367_v15 = vld [vmem:[#allocation2 + $0x154] sm:$0xf] }
 0x130   :  { %v458_v21 = vrot.slane %v454_v17, 4  ;;  %v457_v22 = vrot.slane %v452_v1, 4  ;;  %v223_v49 = vpop.permute.xlu2 %222 }
 0x131   :  { %v229_v9 = vrot.slane %v223_v49, 4 }
 0x132   :  { %v461_v56 = vsel %vm79_vm0, %v457_v22, %v458_v21 }
 0x133   :  { %1059 = vmatpush.bf16.msrb.mxu0 %v1226_v16  ;;  %v462_v23 = vsel %vm318_vm6, %v452_v1, %v461_v56  ;;  %v1261_v44 = vld [vmem:[#allocation2 + $0x110] sm:$0xf]  ;;  %v429_v16 = vrot.slane %v1752_v19, 4  ;;  %v1146_v56 = vor.u32 %v1329_v12, %v1143_v32  ;;  %v731_v12 = vpack.c.b16 %v727_v62, %v727_v62  ;;  %v1303_v32 = vld [vmem:[#allocation2 + $0x168] sm:$0xf0] }
 0x134   :  { %466 = vst [vmem:[#allocation2 + $0x118] sm:$0xff] %v462_v23  ;;  %v1374_v26 = vld [vmem:[#allocation2 + $0x184] sm:$0xf0]  ;;  %v1319_v37 = vld [vmem:[#allocation2 + $0x188] sm:$0xf0] }
 0x135   :  { %v1318_v36 = vor.u32 %v1374_v26, %v1317_v25  ;;  %v1135_v25 = vld [vmem:[#allocation2 + $0x18] sm:$0xf0] }
 0x136   :  { %v1138_v26 = vor.u32 %v1327_v14, %v1135_v25  ;;  %v1361_v14 = vld [vmem:[#allocation2 + $0x124] sm:$0xf] }
 0x137   :  { %1060 = vmatpush.bf16.msrb.mxu0 %v1218_v13  ;;  %1037 = vmatpush.bf16.msra.mxu3 %v1318_v36  ;;  %v253_v0 = vpop.permute.xlu1 %252  ;;  %v251_v30 = vpop.permute.xlu0 %250  ;;  %v730_v13 = vpack.c.b16 %v726_v18, %v726_v18 }
 0x138   :  { %v258_v33 = vrot.slane %v253_v0, 4  ;;  %v257_v34 = vrot.slane %v251_v30, 4  ;;  %v193_v20 = vpop.permute.xlu2 %192 }
 0x139   :  { %999 = vmatmul.bf16.vlgmr.msra.gmra.mxu0 %v730_v13 }
 0x13a   :  { %v263_v4 = vsel %vm79_vm0, %v258_v33, %v259_v28  ;;  %v260_v40 = vsel %vm79_vm0, %v256_v31, %v257_v34  ;;  %1323 = vmatmul.msk.bf16.vlgmr.msra.gmra.mxu3 %vm987_vm9, %v1763_v55  ;;  %v728_v33 = vunpack.c.l.b16 %v1760_v41  ;;  %v200_v41 = vrot.slane %v193_v20, 4 }
 0x13b   :  { %1043 = vmatpush.bf16.msrb.mxu3 %v1186_v29  ;;  %v264_v42 = vsel %vm261_vm3, %v253_v0, %v263_v4  ;;  %v262_v43 = vsel %vm261_vm3, %v1740_v39, %v260_v40  ;;  %v1360_v45 = vld [vmem:[#allocation2 + $0x114] sm:$0xf0]  ;;  %v1333_v39 = vld [vmem:[#allocation2 + $0x44] sm:$0xf]  ;;  %v1127_v0 = vld [vmem:[#allocation2 + $0x8] sm:$0xf0] }
 0x13c   :  { %268 = vst [vmem:[#allocation2 + $0xa8] sm:$0xff] %v264_v42  ;;  %v1262_v47 = vor.u32 %v1360_v45, %v1261_v44  ;;  %v1162_v59 = vor.u32 %v1333_v39, %v1159_v52  ;;  %v1325_v29 = vld [vmem:[#allocation2 + $0x4] sm:$0xf] }
 0x13d   :  { %267 = vst [vmem:[#allocation2 + $0xa0] sm:$0xff] %v262_v43  ;;  %v1130_v30 = vor.u32 %v1325_v29, %v1127_v0  ;;  %v718_v4 = vld [vmem:[%s1803_s2] sm:$0xff]  ;;  %v1480_v43 = vmov 0  }
 0x13e   :  { %1023 = vmatpush.bf16.msra.mxu2 %v1262_v47  ;;  %v1373_v42 = vld [vmem:[#allocation2 + $0x184] sm:$0xf]  ;;  %1389 = vset.pattern.permute.xlu0 %v1480_v43  ;;  %v1784_v47 = vpack.c.b16 %v728_v33, %v728_v33 }
 0x13f   :  { %1044 = vmatpush.bf16.msrb.mxu3 %v1178_v35  ;;  %v422_v50 = vpop.permute.xlu1 %421  ;;  %v420_v51 = vpop.permute.xlu0 %419  ;;  %v1322_v45 = vor.u32 %v1373_v42, %v1319_v37  ;;  %721 = vperm.xlu0 %1389, %v718_v4  }
 0x140   :  { %v428_v46 = vrot.slane %v422_v50, 4  ;;  %v427_v54 = vrot.slane %v420_v51, 4  ;;  %v199_v35 = vpop.permute.xlu2 %198 }
 0x141   :  { %v203_v44 = vrot.slane %v199_v35, 4 }
 0x142   :  { %v431_v57 = vsel %vm79_vm0, %v427_v54, %v428_v46 }
 0x143   :  { %1045 = vmatpush.bf16.msrb.mxu3 %v1170_v48  ;;  %v432_v60 = vsel %vm261_vm3, %v420_v51, %v431_v57  ;;  %v1346_v8 = vld [vmem:[#allocation2 + $0xa4] sm:$0xf0]  ;;  %v1207_v61 = vld [vmem:[#allocation2 + $0xa8] sm:$0xf0] }
 0x144   :  { %437 = vst [vmem:[#allocation2 + $0x100] sm:$0xff] %v432_v60  ;;  %v1205_v58 = vld [vmem:[#allocation2 + $0xa0] sm:$0xf]  ;;  %v1345_v63 = vld [vmem:[#allocation2 + $0xa4] sm:$0xf] }
 0x145   :  { %v1206_v5 = vor.u32 %v1346_v8, %v1205_v58  ;;  %v1210_v6 = vor.u32 %v1345_v63, %v1207_v61 }
 0x147   :  { %1046 = vmatpush.bf16.msrb.mxu3 %v1162_v59  ;;  %1009 = vmatpush.bf16.msra.mxu1 %v1206_v5  ;;  %v221_v10 = vpop.permute.xlu1 %220  ;;  %v426_v3 = vpop.permute.xlu0 %425  ;;  %v1311_v5 = vld [vmem:[#allocation2 + $0x178] sm:$0xf0] }
 0x148   :  { %1061 = vmatpush.bf16.msrb.mxu0 %v1210_v6  ;;  %v228_v17 = vrot.slane %v221_v10, 4  ;;  %v430_v1 = vrot.slane %v426_v3, 4 }
 0x14a   :  { %v232_v21 = vsel %vm79_vm0, %v228_v17, %v229_v9  ;;  %v433_v22 = vsel %vm79_vm0, %v429_v16, %v430_v1  ;;  %v1369_v16 = vld [vmem:[#allocation2 + $0x164] sm:$0xf]  ;;  %v1295_v1 = vld [vmem:[#allocation2 + $0x158] sm:$0xf0] }
 0x14b   :  { %1047 = vmatpush.bf16.msrb.mxu3 %v1154_v11  ;;  %v233_v23 = vsel %vm138_vm7, %v221_v10, %v232_v21  ;;  %v434_v24 = vsel %vm261_vm3, %v1752_v19, %v433_v22  ;;  %v1253_v34 = vld [vmem:[#allocation2 + $0x100] sm:$0xf]  ;;  %v1371_v10 = vld [vmem:[#allocation2 + $0x174] sm:$0xf]  ;;  %v1306_v17 = vor.u32 %v1369_v16, %v1303_v32  ;;  %v1298_v18 = vor.u32 %v1367_v15, %v1295_v1  ;;  %v1365_v21 = vld [vmem:[#allocation2 + $0x144] sm:$0xf] }
 0x14c   :  { %238 = vst [vmem:[#allocation2 + $0x90] sm:$0xff] %v233_v23  ;;  %v1314_v3 = vor.u32 %v1371_v10, %v1311_v5 }
 0x14d   :  { %438 = vst [vmem:[#allocation2 + $0x108] sm:$0xff] %v434_v24  ;;  %v1271_v24 = vld [vmem:[#allocation2 + $0x128] sm:$0xf0] }
 0x14e   :  { %v1274_v25 = vor.u32 %v1361_v14, %v1271_v24 }
 0x14f   :  { %1048 = vmatpush.bf16.msrb.mxu3 %v1146_v56  ;;  %v227_v36 = vpop.permute.xlu1 %226  ;;  %v225_v27 = vpop.permute.xlu0 %224  ;;  %v1279_v56 = vld [vmem:[#allocation2 + $0x138] sm:$0xf0] }
 0x150   :  { %v231_v2 = vrot.slane %v227_v36, 4  ;;  %v230_v28 = vrot.slane %v225_v27, 4 }
 0x152   :  { %v234_v31 = vsel %vm79_vm0, %v230_v28, %v231_v2  ;;  %v1357_v2 = vld [vmem:[#allocation2 + $0x104] sm:$0xf] }
 0x153   :  { %1049 = vmatpush.bf16.msrb.mxu3 %v1138_v26  ;;  %v235_v19 = vsel %vm138_vm7, %v225_v27, %v234_v31  ;;  %v1197_v46 = vld [vmem:[#allocation2 + $0x90] sm:$0xf]  ;;  %v1343_v59 = vld [vmem:[#allocation2 + $0x94] sm:$0xf]  ;;  %v1263_v26 = vld [vmem:[#allocation2 + $0x118] sm:$0xf0] }
 0x154   :  { %239 = vst [vmem:[#allocation2 + $0x98] sm:$0xff] %v235_v19  ;;  %v1358_v38 = vld [vmem:[#allocation2 + $0x104] sm:$0xf0]  ;;  %v1255_v27 = vld [vmem:[#allocation2 + $0x108] sm:$0xf0] }
 0x155   :  { %v1254_v40 = vor.u32 %v1358_v38, %v1253_v34  ;;  %v1258_v28 = vor.u32 %v1357_v2, %v1255_v27 }
 0x157   :  { %1050 = vmatpush.bf16.msrb.mxu3 %v1130_v30  ;;  %1024 = vmatpush.bf16.msra.mxu2 %v1254_v40  ;;  %v197_v48 = vpop.permute.xlu1 %196  ;;  %v195_v49 = vpop.permute.xlu0 %194 }
 0x158   :  { %v202_v50 = vrot.slane %v197_v48, 4  ;;  %v201_v51 = vrot.slane %v195_v49, 4 }
 0x15a   :  { %1051 = vmatmul.bf16.vlgmr.msrb.gmra.mxu3 %v730_v13  ;;  %v206_v52 = vsel %vm79_vm0, %v202_v50, %v203_v44  ;;  %v204_v53 = vsel %vm79_vm0, %v200_v41, %v201_v51  ;;  %1025 = vmatmul.bf16.vlgmr.msra.gmra.mxu2 %v1784_v47  ;;  %v1363_v13 = vld [vmem:[#allocation2 + $0x134] sm:$0xf]  ;;  %v1098_v44 = vstv %s1804_s3  ;;  %s1112_s3 = sshll.u32 %s1805_s4, 4  ;;  %s1113_s3 = int_to_ptr.hbm [resolvable:$true] %s1112_s3 }
 0x15b   :  { %1089 = vmatpush.bf16.msrb.mxu2 %v1322_v45  ;;  %v207_v54 = vsel %vm81_vm1, %v197_v48, %v206_v52  ;;  %v205_v39 = vsel %vm81_vm1, %v193_v20, %v204_v53  ;;  %v1344_v57 = vld [vmem:[#allocation2 + $0x94] sm:$0xf0]  ;;  %v1199_v60 = vld [vmem:[#allocation2 + $0x98] sm:$0xf0]  ;;  %v1287_v20 = vld [vmem:[#allocation2 + $0x148] sm:$0xf0]  ;;  %v1282_v23 = vor.u32 %v1363_v13, %v1279_v56 }
 0x15c   :  { %211 = vst [vmem:[#allocation2 + $0x88] sm:$0xff] %v207_v54  ;;  %v1198_v8 = vor.u32 %v1344_v57, %v1197_v46  ;;  %v1202_v61 = vor.u32 %v1343_v59, %v1199_v60  ;;  %v1290_v22 = vor.u32 %v1365_v21, %v1287_v20 }
 0x15d   :  { %210 = vst [vmem:[#allocation2 + $0x80] sm:$0xff] %v205_v39 }
 0x15e   :  { %1010 = vmatpush.bf16.msra.mxu1 %v1198_v8  ;;  %1062 = vmatpush.bf16.msrb.mxu0 %v1202_v61 }
 0x163   :  { %v1342_v58 = vld [vmem:[#allocation2 + $0x84] sm:$0xf0]  ;;  %v1191_v63 = vld [vmem:[#allocation2 + $0x88] sm:$0xf0] }
 0x164   :  { %v1189_v6 = vld [vmem:[#allocation2 + $0x80] sm:$0xf]  ;;  %v1341_v7 = vld [vmem:[#allocation2 + $0x84] sm:$0xf] }
 0x165   :  { %v1190_v9 = vor.u32 %v1342_v58, %v1189_v6  ;;  %v1194_v11 = vor.u32 %v1341_v7, %v1191_v63 }
 0x167   :  { %1011 = vmatpush.bf16.msra.mxu1 %v1190_v9  ;;  %1063 = vmatpush.bf16.msrb.mxu0 %v1194_v11 }
 0x16a   :  { %1012 = vmatmul.bf16.vlgmr.msra.gmra.mxu1 %v731_v12  ;;  %1324 = vmatmul.msk.bf16.vlgmr.msrb.gmra.mxu2 %vm987_vm9, %v1763_v55  ;;  %v1359_v55 = vld [vmem:[#allocation2 + $0x114] sm:$0xf] }
 0x16b   :  { %1069 = vmatpush.bf16.msrb.mxu1 %v1314_v3  ;;  %1064 = vmatmul.bf16.vlgmr.msrb.gmra.mxu0 %v731_v12  ;;  %v1266_v36 = vor.u32 %v1359_v55, %v1263_v26 }
 0x16f   :  { %1070 = vmatpush.bf16.msrb.mxu1 %v1306_v17 }
 0x173   :  { %1071 = vmatpush.bf16.msrb.mxu1 %v1298_v18 }
 0x177   :  { %1072 = vmatpush.bf16.msrb.mxu1 %v1290_v22 }
 0x17b   :  { %1073 = vmatpush.bf16.msrb.mxu1 %v1282_v23 }
 0x17f   :  { %1074 = vmatpush.bf16.msrb.mxu1 %v1274_v25 }
 0x183   :  { %1075 = vmatpush.bf16.msrb.mxu1 %v1266_v36 }
 0x187   :  { %1076 = vmatpush.bf16.msrb.mxu1 %v1258_v28 }
 0x18a   :  { %1077 = vmatmul.bf16.vlgmr.msrb.gmra.mxu1 %v1784_v47 }
 0x1b1   :  { %v722_v34 = vpop.permute.xlu0 %721 }
 0x1b6   :  { %v1000_v0 = vpop.f32.mrf.mxu0 }
 0x1b7   :  { %v1001_v37 = vadd.f32 %v1000_v0, %v722_v34 }
 0x1bd   :  { %v1039_v29 = vpop.f32.mrf.mxu3 }
 0x1be   :  { %v1002_v31 = vpop.f32.mrf.mxu0 }
 0x1c5   :  { %v1041_v30 = vpop.f32.mrf.mxu3 }
 0x1dd   :  { %v1052_v33 = vpop.f32.mrf.mxu3  ;;  %v1026_v19 = vpop.f32.mrf.mxu2 }
 0x1de   :  { %v1053_v52 = vadd.f32 %v1052_v33, %v722_v34 }
 0x1e5   :  { %v1054_v35 = vpop.f32.mrf.mxu3  ;;  %v1028_v38 = vpop.f32.mrf.mxu2 }
 0x1e7   :  { %v1013_v4 = vpop.f32.mrf.mxu1 }
 0x1e8   :  { %v1014_v40 = vadd.f32 %v1013_v4, %v1001_v37  ;;  %v1065_v42 = vpop.f32.mrf.mxu0 }
 0x1e9   :  { %v1066_v53 = vadd.f32 %v1065_v42, %v1053_v52 }
 0x1ea   :  { %v1027_v43 = vadd.f32 %v1026_v19, %v1014_v40 }
 0x1ec   :  { %v1040_v45 = vadd.f32 %v1039_v29, %v1027_v43 }
 0x1ed   :  { %v1091_v47 = vpop.f32.mrf.mxu2 }
 0x1ee   :  { %vm1096_vm10 = vcmp.gt.f32.partialorder %v1040_v45, 0.0  ;;  %v1099_v48 = vmul.f32 %v1098_v44, %v1040_v45 }
 0x1ef   :  { %v1015_v49 = vpop.f32.mrf.mxu1 }
 0x1f0   :  { %v1067_v41 = vpop.f32.mrf.mxu0  ;;  %v1101_v50 = vsel %vm1096_vm10, %v1040_v45, %v1099_v48 }
 0x1f1   :  { %1103 = vst [vmem:[#allocation9] sm:$0xff] %v1101_v50 }
 0x1f5   :  { %v1093_v51 = vpop.f32.mrf.mxu2 }
 0x207   :  { %v1078_v46 = vpop.f32.mrf.mxu1 }
 0x208   :  { %v1079_v54 = vadd.f32 %v1078_v46, %v1066_v53 }
 0x20a   :  { %v1092_v39 = vadd.f32 %v1091_v47, %v1079_v54 }
 0x20c   :  { %vm1097_vm11 = vcmp.gt.f32.partialorder %v1092_v39, 0.0  ;;  %v1100_v57 = vmul.f32 %v1098_v44, %v1092_v39 }
 0x20e   :  { %v1102_v59 = vsel %vm1097_vm11, %v1092_v39, %v1100_v57 }
 0x20f   :  { %v1080_v60 = vpop.f32.mrf.mxu1  ;;  %1104 = vst [vmem:[#allocation9 + $0x8] sm:$0xff] %v1102_v59 }
 0x210   :  { %1115 = dma.vmem_to_hbm [thread:$0]  %s1111_s11, 256, %s1113_s3, [#allocation6]  }
 0x211   :  { %1466 = dma.done.wait [#allocation6], 256  }
 0x212   :  { %1467 = vsyncadd [#allocation6], 4294967040 }
 0x213   :  { %1120 = vsyncpa [#allocation5], 1 }
 0x214   :  { %1121 = vsyncpa [#allocation8], 1 }
 0x215   :  { %1122 = vsyncpa [#allocation6], 1 }

</bundles_post_ra>
